<compile_context>
chip_gen: v6e
topology: v6e:2x2x1
jax: 0.10.0
libtpu: 0.0.40
codegen_flags: <defaults>
</compile_context>

<pallas_src>
import functools

import jax
import jax.numpy as jnp
from jax.experimental import pallas as pl
from jax.experimental.pallas import tpu as pltpu


# -----------------------------------------------------------------------------
# Fused Pallas kernel
# -----------------------------------------------------------------------------
def _loss_kernel(*refs, num_layers, regr_dim, bbox_mean_div, ce_rows):
    """All loss terms computed in one kernel invocation.

    Per layer (7 refs): heat_pred(B*C,HW), heat_gt(B*C,HW),
                        tl_pred(B,M*rd), tl_gt, br_pred, br_gt, mask(B,M*rd)
    RCNN (10 refs):     bp_tl, bt_tl, iw_tl, ow_tl, bp_br, bt_br, iw_br, ow_br
                        (each (B,R*d)), cls_logits(B*R,nc), labels(B*R,1) int32
    Output: (8,128) f32 block broadcast-filled with the scalar total loss.
    """
    n_in = num_layers * 7 + 10
    in_refs = refs[:n_in]
    o_ref = refs[n_in]
    f32 = jnp.float32

    focal_sum = jnp.zeros((1, 1), f32)      # -(pos_loss + neg_loss) accumulated
    num_pos_tot = jnp.zeros((1, 1), f32)    # numf
    regr_sum = jnp.zeros((1, 1), f32)       # corner smooth-L1 sum
    num_regr_tot = jnp.zeros((1, 1), f32)   # numr

    idx = 0
    for _ in range(num_layers):
        hp = in_refs[idx + 0][...]          # heat predictions (sigmoid outputs)
        hg = in_refs[idx + 1][...]          # heat ground truth in [0, 1]
        tlp = in_refs[idx + 2][...]
        tlg = in_refs[idx + 3][...]
        brp = in_refs[idx + 4][...]
        brg = in_refs[idx + 5][...]
        msk = in_refs[idx + 6][...]         # 0/1 mask, repeated over coord dim
        idx += 7

        # ---- focal loss (_neg_loss): per-layer sums, count of positives ----
        pos = (hg == 1.0).astype(f32)
        neg = (hg < 1.0).astype(f32)
        neg_w = (1.0 - hg) ** 4
        pos_term = jnp.log(hp) * (1.0 - hp) ** 2 * pos
        neg_term = jnp.log(1.0 - hp) * (hp * hp) * neg_w * neg
        focal_sum = focal_sum - (jnp.sum(pos_term, keepdims=True)
                                 + jnp.sum(neg_term, keepdims=True))
        num_pos_tot = num_pos_tot + jnp.sum(pos, keepdims=True)

        # ---- corner regression (_regr_loss) for br then tl ----
        for p, g in ((brp, brg), (tlp, tlg)):
            d = (p - g) * msk               # masked diff; smooth_l1(0)=0
            ad = jnp.abs(d)
            sl1 = jnp.where(ad < 1.0, 0.5 * d * d, ad - 0.5)
            regr_sum = regr_sum + jnp.sum(sl1, keepdims=True)
            # _regr_loss returns mask.sum(); msk was repeated regr_dim times.
            num_regr_tot = num_regr_tot + jnp.sum(msk, keepdims=True) / regr_dim

    (bp_tl, bt_tl, iw_tl, ow_tl,
     bp_br, bt_br, iw_br, ow_br,
     cls_logits, labels) = (r[...] for r in in_refs[idx:idx + 10])

    # ---- RCNN smooth-L1 bbox loss (sigma=1): sum(ow * smoothL1(iw*diff)) ----
    bbox_sum = jnp.zeros((1, 1), f32)
    for bp, bt, iw, ow in ((bp_tl, bt_tl, iw_tl, ow_tl),
                           (bp_br, bt_br, iw_br, ow_br)):
        d = iw * (bp - bt)
        ad = jnp.abs(d)
        sl1 = jnp.where(ad < 1.0, 0.5 * d * d, ad - 0.5)
        bbox_sum = bbox_sum + jnp.sum(ow * sl1, keepdims=True)
    # .sum(dim=1).mean() over a (B, R, d_tl+d_br) tensor == total / (B*(d_tl+d_br))
    rcnn_loss_bbox = bbox_sum / bbox_mean_div

    # ---- RCNN cross-entropy classification loss (mean over B*R rows) ----
    x = cls_logits                                          # (B*R, nclasses)
    xmax = jnp.max(x, axis=-1, keepdims=True)
    lse = jnp.log(jnp.sum(jnp.exp(x - xmax), axis=-1, keepdims=True)) + xmax
    cols = jax.lax.broadcasted_iota(jnp.int32, x.shape, 1)
    onehot = (cols == labels).astype(f32)                   # labels: (B*R, 1)
    picked = jnp.sum(x * onehot, axis=-1, keepdims=True)
    rcnn_loss_cls = jnp.sum(lse - picked, keepdims=True) / ce_rows

    # ---- normalization guards + total ----
    focal = jnp.where(num_pos_tot > 0.0,
                      focal_sum / jnp.maximum(num_pos_tot, 1.0), focal_sum)
    corner = jnp.where(num_regr_tot > 0.0,
                       regr_sum / jnp.maximum(num_regr_tot, 1.0), regr_sum)

    total = focal + corner + rcnn_loss_bbox + rcnn_loss_cls           # (1, 1)
    o_ref[...] = jnp.broadcast_to(total, o_ref.shape).astype(o_ref.dtype)


# -----------------------------------------------------------------------------
# Wrapper: reshape everything to lane-dense 2D and launch ONE pallas_call
# -----------------------------------------------------------------------------
def matrixnet_anchors_loss(outs, targets):
    anchors_heats = outs[0]
    anchors_tl_corners_regrs = outs[1]
    anchors_br_corners_regrs = outs[2]
    (rois, cls_score, cls_prob, bbox_pred_tl, bbox_pred_br,
     bbox_targets_tl, bbox_targets_br, rois_label,
     bbox_inside_weights, bbox_outside_weights, nclasses) = outs[3:]
    gt_anchors_heat, gt_tl_corners_regr, gt_br_corners_regr, gt_mask = (
        targets[0], targets[1], targets[2], targets[3])

    num_layers = len(anchors_heats)
    f32 = jnp.float32
    inputs = []

    for i in range(num_layers):
        hp = anchors_heats[i].astype(f32)
        hg = gt_anchors_heat[i].astype(f32)
        b, c, h, w = hp.shape
        inputs += [hp.reshape(b * c, h * w), hg.reshape(b * c, h * w)]

        tlp = anchors_tl_corners_regrs[i].astype(f32)
        tlg = gt_tl_corners_regr[i].astype(f32)
        brp = anchors_br_corners_regrs[i].astype(f32)
        brg = gt_br_corners_regr[i].astype(f32)
        bm, m, rd = tlp.shape
        msk = jnp.repeat(gt_mask[i].astype(f32), rd, axis=1)      # (B, M*rd)
        inputs += [tlp.reshape(bm, m * rd), tlg.reshape(bm, m * rd),
                   brp.reshape(bm, m * rd), brg.reshape(bm, m * rd), msk]

    regr_dim = gt_tl_corners_regr[0].shape[2]
    B, R = cls_score.shape[0], cls_score.shape[1]
    d_tl = bbox_pred_tl.shape[2]
    d_br = bbox_pred_br.shape[2]

    iw = bbox_inside_weights.astype(f32)
    ow = bbox_outside_weights.astype(f32)
    inputs += [
        bbox_pred_tl.astype(f32).reshape(B, R * d_tl),
        bbox_targets_tl.astype(f32).reshape(B, R * d_tl),
        iw[:, :, :d_tl].reshape(B, R * d_tl),
        ow[:, :, :d_tl].reshape(B, R * d_tl),
        bbox_pred_br.astype(f32).reshape(B, R * d_br),
        bbox_targets_br.astype(f32).reshape(B, R * d_br),
        iw[:, :, d_tl:d_tl + d_br].reshape(B, R * d_br),
        ow[:, :, d_tl:d_tl + d_br].reshape(B, R * d_br),
        cls_score.astype(f32).reshape(B * R, nclasses),
        rois_label.reshape(B * R, 1).astype(jnp.int32),
    ]

    in_specs = [pl.BlockSpec(a.shape, lambda i: (0, 0)) for a in inputs]

    kernel = functools.partial(
        _loss_kernel,
        num_layers=num_layers,
        regr_dim=float(regr_dim),
        bbox_mean_div=float(B * (d_tl + d_br)),
        ce_rows=float(B * R),
    )

    out = pl.pallas_call(
        kernel,
        out_shape=jax.ShapeDtypeStruct((8, 128), jnp.float32),
        grid_spec=pltpu.PrefetchScalarGridSpec(
            num_scalar_prefetch=0,
            grid=(1,),
            in_specs=in_specs,
            out_specs=pl.BlockSpec((8, 128), lambda i: (0, 0)),
        ),
        compiler_params=pltpu.CompilerParams(
            dimension_semantics=("arbitrary",)),
    )(*inputs)

    return out[0, :1]        # shape (1,), matches loss.unsqueeze(0)


# -----------------------------------------------------------------------------
# Pure-JAX reference (mirrors the PyTorch forward) for correctness checking
# -----------------------------------------------------------------------------
def _neg_loss_ref(preds, gt):
    pos = (gt == 1.0).astype(jnp.float32)
    neg = (gt < 1.0).astype(jnp.float32)
    neg_weights = (1.0 - gt) ** 4
    num_pos = jnp.sum(pos)
    loss = jnp.float32(0.0)
    for pred in preds:
        pos_loss = jnp.sum(jnp.log(pred) * (1.0 - pred) ** 2 * pos)
        neg_loss = jnp.sum(jnp.log(1.0 - pred) * pred ** 2 * neg_weights * neg)
        loss = loss - (pos_loss + neg_loss)
    return loss, num_pos


def _regr_loss_ref(regr, gt_regr, mask):
    num = jnp.sum(mask)
    d = (regr - gt_regr) * mask[:, :, None].astype(regr.dtype)
    ad = jnp.abs(d)
    sl1 = jnp.where(ad < 1.0, 0.5 * d * d, ad - 0.5)
    return jnp.sum(sl1), num


def matrixnet_anchors_loss_ref(outs, targets):
    anchors_heats, tl_regrs, br_regrs = outs[0], outs[1], outs[2]
    (rois, cls_score, cls_prob, bbox_pred_tl, bbox_pred_br,
     bbox_targets_tl, bbox_targets_br, rois_label,
     bbox_inside_weights, bbox_outside_weights, nclasses) = outs[3:]
    gt_heat, gt_tl, gt_br, gt_mask = targets

    focal_loss = jnp.float32(0.0)
    corner_regr_loss = jnp.float32(0.0)
    numf = jnp.float32(0.0)
    numr = jnp.float32(0.0)
    for i in range(len(anchors_heats)):
        floss, num = _neg_loss_ref([anchors_heats[i]], gt_heat[i])
        focal_loss += floss
        numf += num
        rloss, num = _regr_loss_ref(br_regrs[i], gt_br[i], gt_mask[i])
        corner_regr_loss += rloss
        numr += num
        rloss, num = _regr_loss_ref(tl_regrs[i], gt_tl[i], gt_mask[i])
        corner_regr_loss += rloss
        numr += num
    corner_regr_loss = jnp.where(
        numr > 0, corner_regr_loss / jnp.maximum(numr, 1.0), corner_regr_loss)
    focal_loss = jnp.where(
        numf > 0, focal_loss / jnp.maximum(numf, 1.0), focal_loss)

    diff = jnp.concatenate([bbox_pred_tl - bbox_targets_tl,
                            bbox_pred_br - bbox_targets_br], axis=2)
    in_d = bbox_inside_weights * diff
    a = jnp.abs(in_d)
    sign = (a < 1.0).astype(jnp.float32)
    in_loss = in_d ** 2 * 0.5 * sign + (a - 0.5) * (1.0 - sign)
    out_loss = bbox_outside_weights * in_loss
    rcnn_loss_bbox = out_loss.sum(axis=1).mean()

    logits = cls_score.reshape(-1, nclasses)
    labels = rois_label.reshape(-1).astype(jnp.int32)
    logp = jax.nn.log_softmax(logits, axis=-1)
    rcnn_loss_cls = -jnp.mean(jnp.take_along_axis(logp, labels[:, None], axis=1))

    loss = focal_loss + corner_regr_loss + rcnn_loss_bbox + rcnn_loss_cls
    return loss.reshape(1)


# -----------------------------------------------------------------------------
if __name__ == "__main__":
    key = jax.random.PRNGKey(0)
    ks = iter(jax.random.split(key, 64))

    B = 2                                     # batch
    C_heat = 4                                # heatmap classes
    layer_hw = [(16, 16), (16, 8), (8, 8)]    # matrix layers (varied strides)
    M = 16                                    # max objects per layer
    R = 32                                    # ROIs per image
    nclasses = 8

    anchors_heats, gt_heats = [], []
    tl_preds, br_preds, gt_tls, gt_brs, masks = [], [], [], [], []
    for (h, w) in layer_hw:
        heat = jax.nn.sigmoid(
            jax.random.normal(next(ks), (B, C_heat, h, w), jnp.float32))
        gt = jax.random.uniform(next(ks), (B, C_heat, h, w), jnp.float32,
                                0.0, 0.95)
        gt = jnp.where(jax.random.uniform(next(ks), gt.shape) < 0.05, 1.0, gt)
        gt = gt.at[0, 0, 0, 0].set(1.0)       # guarantee >= 1 positive
        anchors_heats.append(heat)
        gt_heats.append(gt)

        tl_preds.append(jax.random.normal(next(ks), (B, M, 2), jnp.float32))
        br_preds.append(jax.random.normal(next(ks), (B, M, 2), jnp.float32))
        gt_tls.append(jax.random.normal(next(ks), (B, M, 2), jnp.float32))
        gt_brs.append(jax.random.normal(next(ks), (B, M, 2), jnp.float32))
        m = (jax.random.uniform(next(ks), (B, M)) < 0.6).astype(jnp.float32)
        m = m.at[:, 0].set(1.0)               # guarantee numr > 0
        masks.append(m)

    rois = jax.random.uniform(next(ks), (B, R, 5), jnp.float32)   # unused
    cls_score = jax.random.normal(next(ks), (B, R, nclasses), jnp.float32)
    cls_prob = jax.nn.softmax(cls_score, axis=-1)                 # unused
    bbox_pred_tl = jax.random.normal(next(ks), (B, R, 2), jnp.float32)
    bbox_pred_br = jax.random.normal(next(ks), (B, R, 2), jnp.float32)
    bbox_targets_tl = jax.random.normal(next(ks), (B, R, 2), jnp.float32)
    bbox_targets_br = jax.random.normal(next(ks), (B, R, 2), jnp.float32)
    rois_label = jax.random.randint(next(ks), (B, R), 0, nclasses)
    bbox_inside_weights = (
        jax.random.uniform(next(ks), (B, R, 4)) < 0.7).astype(jnp.float32)
    bbox_outside_weights = jax.random.uniform(next(ks), (B, R, 4), jnp.float32)

    outs = [anchors_heats, tl_preds, br_preds,
            rois, cls_score, cls_prob, bbox_pred_tl, bbox_pred_br,
            bbox_targets_tl, bbox_targets_br, rois_label,
            bbox_inside_weights, bbox_outside_weights, nclasses]
    targets = [gt_heats, gt_tls, gt_brs, masks]

    loss = jax.block_until_ready(matrixnet_anchors_loss(outs, targets))
    assert loss.shape == (1,), loss.shape

    ref = jax.block_until_ready(matrixnet_anchors_loss_ref(outs, targets))
    err = float(jnp.max(jnp.abs(loss - ref)))
    assert jnp.allclose(loss, ref, atol=2e-3, rtol=2e-3), (
        err, float(loss[0]), float(ref[0]))

    print("KERNEL_OK")
</pallas_src>

<mosaic_0001>
module attributes {stable_mosaic.version = 11 : i64} {
  func.func @_loss_kernel(%arg0: i32, %arg1: memref<8x256xf32, #tpu.memory_space<vmem>>, %arg2: memref<8x256xf32, #tpu.memory_space<vmem>>, %arg3: memref<2x32xf32, #tpu.memory_space<vmem>>, %arg4: memref<2x32xf32, #tpu.memory_space<vmem>>, %arg5: memref<2x32xf32, #tpu.memory_space<vmem>>, %arg6: memref<2x32xf32, #tpu.memory_space<vmem>>, %arg7: memref<2x32xf32, #tpu.memory_space<vmem>>, %arg8: memref<8x128xf32, #tpu.memory_space<vmem>>, %arg9: memref<8x128xf32, #tpu.memory_space<vmem>>, %arg10: memref<2x32xf32, #tpu.memory_space<vmem>>, %arg11: memref<2x32xf32, #tpu.memory_space<vmem>>, %arg12: memref<2x32xf32, #tpu.memory_space<vmem>>, %arg13: memref<2x32xf32, #tpu.memory_space<vmem>>, %arg14: memref<2x32xf32, #tpu.memory_space<vmem>>, %arg15: memref<8x64xf32, #tpu.memory_space<vmem>>, %arg16: memref<8x64xf32, #tpu.memory_space<vmem>>, %arg17: memref<2x32xf32, #tpu.memory_space<vmem>>, %arg18: memref<2x32xf32, #tpu.memory_space<vmem>>, %arg19: memref<2x32xf32, #tpu.memory_space<vmem>>, %arg20: memref<2x32xf32, #tpu.memory_space<vmem>>, %arg21: memref<2x32xf32, #tpu.memory_space<vmem>>, %arg22: memref<2x64xf32, #tpu.memory_space<vmem>>, %arg23: memref<2x64xf32, #tpu.memory_space<vmem>>, %arg24: memref<2x64xf32, #tpu.memory_space<vmem>>, %arg25: memref<2x64xf32, #tpu.memory_space<vmem>>, %arg26: memref<2x64xf32, #tpu.memory_space<vmem>>, %arg27: memref<2x64xf32, #tpu.memory_space<vmem>>, %arg28: memref<2x64xf32, #tpu.memory_space<vmem>>, %arg29: memref<2x64xf32, #tpu.memory_space<vmem>>, %arg30: memref<64x8xf32, #tpu.memory_space<vmem>>, %arg31: memref<64x1xi32, #tpu.memory_space<vmem>>, %arg32: memref<8x128xf32, #tpu.memory_space<vmem>>) attributes {dimension_semantics = [#tpu.dimension_semantics<arbitrary>], iteration_bounds = array<i64: 1>, scalar_prefetch = 0 : i64, scratch_operands = 0 : i64, tpu.core_type = #tpu.core_type<tc>, window_params = [{pipeline_mode = #tpu.pipeline_mode<synchronous>, transform_indices = @transform_0, window_bounds = array<i64: 8, 256>}, {pipeline_mode = #tpu.pipeline_mode<synchronous>, transform_indices = @transform_1, window_bounds = array<i64: 8, 256>}, {pipeline_mode = #tpu.pipeline_mode<synchronous>, transform_indices = @transform_2, window_bounds = array<i64: 2, 32>}, {pipeline_mode = #tpu.pipeline_mode<synchronous>, transform_indices = @transform_3, window_bounds = array<i64: 2, 32>}, {pipeline_mode = #tpu.pipeline_mode<synchronous>, transform_indices = @transform_4, window_bounds = array<i64: 2, 32>}, {pipeline_mode = #tpu.pipeline_mode<synchronous>, transform_indices = @transform_5, window_bounds = array<i64: 2, 32>}, {pipeline_mode = #tpu.pipeline_mode<synchronous>, transform_indices = @transform_6, window_bounds = array<i64: 2, 32>}, {pipeline_mode = #tpu.pipeline_mode<synchronous>, transform_indices = @transform_7, window_bounds = array<i64: 8, 128>}, {pipeline_mode = #tpu.pipeline_mode<synchronous>, transform_indices = @transform_8, window_bounds = array<i64: 8, 128>}, {pipeline_mode = #tpu.pipeline_mode<synchronous>, transform_indices = @transform_9, window_bounds = array<i64: 2, 32>}, {pipeline_mode = #tpu.pipeline_mode<synchronous>, transform_indices = @transform_10, window_bounds = array<i64: 2, 32>}, {pipeline_mode = #tpu.pipeline_mode<synchronous>, transform_indices = @transform_11, window_bounds = array<i64: 2, 32>}, {pipeline_mode = #tpu.pipeline_mode<synchronous>, transform_indices = @transform_12, window_bounds = array<i64: 2, 32>}, {pipeline_mode = #tpu.pipeline_mode<synchronous>, transform_indices = @transform_13, window_bounds = array<i64: 2, 32>}, {pipeline_mode = #tpu.pipeline_mode<synchronous>, transform_indices = @transform_14, window_bounds = array<i64: 8, 64>}, {pipeline_mode = #tpu.pipeline_mode<synchronous>, transform_indices = @transform_15, window_bounds = array<i64: 8, 64>}, {pipeline_mode = #tpu.pipeline_mode<synchronous>, transform_indices = @transform_16, window_bounds = array<i64: 2, 32>}, {pipeline_mode = #tpu.pipeline_mode<synchronous>, transform_indices = @transform_17, window_bounds = array<i64: 2, 32>}, {pipeline_mode = #tpu.pipeline_mode<synchronous>, transform_indices = @transform_18, window_bounds = array<i64: 2, 32>}, {pipeline_mode = #tpu.pipeline_mode<synchronous>, transform_indices = @transform_19, window_bounds = array<i64: 2, 32>}, {pipeline_mode = #tpu.pipeline_mode<synchronous>, transform_indices = @transform_20, window_bounds = array<i64: 2, 32>}, {pipeline_mode = #tpu.pipeline_mode<synchronous>, transform_indices = @transform_21, window_bounds = array<i64: 2, 64>}, {pipeline_mode = #tpu.pipeline_mode<synchronous>, transform_indices = @transform_22, window_bounds = array<i64: 2, 64>}, {pipeline_mode = #tpu.pipeline_mode<synchronous>, transform_indices = @transform_23, window_bounds = array<i64: 2, 64>}, {pipeline_mode = #tpu.pipeline_mode<synchronous>, transform_indices = @transform_24, window_bounds = array<i64: 2, 64>}, {pipeline_mode = #tpu.pipeline_mode<synchronous>, transform_indices = @transform_25, window_bounds = array<i64: 2, 64>}, {pipeline_mode = #tpu.pipeline_mode<synchronous>, transform_indices = @transform_26, window_bounds = array<i64: 2, 64>}, {pipeline_mode = #tpu.pipeline_mode<synchronous>, transform_indices = @transform_27, window_bounds = array<i64: 2, 64>}, {pipeline_mode = #tpu.pipeline_mode<synchronous>, transform_indices = @transform_28, window_bounds = array<i64: 2, 64>}, {pipeline_mode = #tpu.pipeline_mode<synchronous>, transform_indices = @transform_29, window_bounds = array<i64: 64, 8>}, {pipeline_mode = #tpu.pipeline_mode<synchronous>, transform_indices = @transform_30, window_bounds = array<i64: 64, 1>}, {pipeline_mode = #tpu.pipeline_mode<synchronous>, transform_indices = @transform_31, window_bounds = array<i64: 8, 128>}]} {
    %cst = arith.constant 0.000000e+00 : f32
    %0 = vector.broadcast %cst : f32 to vector<1x1xf32>
    %cst_0 = arith.constant 0.000000e+00 : f32
    %1 = vector.broadcast %cst_0 : f32 to vector<1x1xf32>
    %cst_1 = arith.constant 0.000000e+00 : f32
    %2 = vector.broadcast %cst_1 : f32 to vector<1x1xf32>
    %cst_2 = arith.constant 0.000000e+00 : f32
    %3 = vector.broadcast %cst_2 : f32 to vector<1x1xf32>
    %c0 = arith.constant 0 : index
    %c0_3 = arith.constant 0 : index
    %4 = vector.load %arg1[%c0, %c0_3] : memref<8x256xf32, #tpu.memory_space<vmem>>, vector<8x256xf32>
    %c0_4 = arith.constant 0 : index
    %c0_5 = arith.constant 0 : index
    %5 = vector.load %arg2[%c0_4, %c0_5] : memref<8x256xf32, #tpu.memory_space<vmem>>, vector<8x256xf32>
    %c0_6 = arith.constant 0 : index
    %c0_7 = arith.constant 0 : index
    %6 = vector.load %arg3[%c0_6, %c0_7] : memref<2x32xf32, #tpu.memory_space<vmem>>, vector<2x32xf32>
    %c0_8 = arith.constant 0 : index
    %c0_9 = arith.constant 0 : index
    %7 = vector.load %arg4[%c0_8, %c0_9] : memref<2x32xf32, #tpu.memory_space<vmem>>, vector<2x32xf32>
    %c0_10 = arith.constant 0 : index
    %c0_11 = arith.constant 0 : index
    %8 = vector.load %arg5[%c0_10, %c0_11] : memref<2x32xf32, #tpu.memory_space<vmem>>, vector<2x32xf32>
    %c0_12 = arith.constant 0 : index
    %c0_13 = arith.constant 0 : index
    %9 = vector.load %arg6[%c0_12, %c0_13] : memref<2x32xf32, #tpu.memory_space<vmem>>, vector<2x32xf32>
    %c0_14 = arith.constant 0 : index
    %c0_15 = arith.constant 0 : index
    %10 = vector.load %arg7[%c0_14, %c0_15] : memref<2x32xf32, #tpu.memory_space<vmem>>, vector<2x32xf32>
    %cst_16 = arith.constant 1.000000e+00 : f32
    %11 = vector.broadcast %cst_16 : f32 to vector<8x256xf32>
    %12 = arith.cmpf oeq, %5, %11 : vector<8x256xf32>
    %13 = arith.extui %12 : vector<8x256xi1> to vector<8x256xi32>
    %14 = arith.sitofp %13 : vector<8x256xi32> to vector<8x256xf32>
    %cst_17 = arith.constant 1.000000e+00 : f32
    %15 = vector.broadcast %cst_17 : f32 to vector<8x256xf32>
    %16 = arith.cmpf olt, %5, %15 : vector<8x256xf32>
    %17 = arith.extui %16 : vector<8x256xi1> to vector<8x256xi32>
    %18 = arith.sitofp %17 : vector<8x256xi32> to vector<8x256xf32>
    %cst_18 = arith.constant 1.000000e+00 : f32
    %19 = vector.broadcast %cst_18 : f32 to vector<8x256xf32>
    %20 = arith.subf %19, %5 : vector<8x256xf32>
    %21 = arith.mulf %20, %20 : vector<8x256xf32>
    %22 = arith.mulf %21, %21 : vector<8x256xf32>
    %23 = math.log %4 : vector<8x256xf32>
    %cst_19 = arith.constant 1.000000e+00 : f32
    %24 = vector.broadcast %cst_19 : f32 to vector<8x256xf32>
    %25 = arith.subf %24, %4 : vector<8x256xf32>
    %26 = arith.mulf %25, %25 : vector<8x256xf32>
    %27 = arith.mulf %23, %26 : vector<8x256xf32>
    %28 = arith.mulf %27, %14 : vector<8x256xf32>
    %cst_20 = arith.constant 1.000000e+00 : f32
    %29 = vector.broadcast %cst_20 : f32 to vector<8x256xf32>
    %30 = arith.subf %29, %4 : vector<8x256xf32>
    %31 = math.log %30 : vector<8x256xf32>
    %32 = arith.mulf %4, %4 : vector<8x256xf32>
    %33 = arith.mulf %31, %32 : vector<8x256xf32>
    %34 = arith.mulf %33, %22 : vector<8x256xf32>
    %35 = arith.mulf %34, %18 : vector<8x256xf32>
    %36 = vector.shape_cast %28 : vector<8x256xf32> to vector<1x8x256xf32>
    %cst_21 = arith.constant dense<0.000000e+00> : vector<1xf32>
    %37 = vector.multi_reduction <add>, %36, %cst_21 [1, 2] : vector<1x8x256xf32> to vector<1xf32>
    %38 = vector.shape_cast %37 : vector<1xf32> to vector<1x1x1xf32>
    %39 = vector.extract %38[0, 0, 0] : f32 from vector<1x1x1xf32>
    %40 = vector.broadcast %39 : f32 to vector<1x1xf32>
    %41 = vector.shape_cast %35 : vector<8x256xf32> to vector<1x8x256xf32>
    %cst_22 = arith.constant dense<0.000000e+00> : vector<1xf32>
    %42 = vector.multi_reduction <add>, %41, %cst_22 [1, 2] : vector<1x8x256xf32> to vector<1xf32>
    %43 = vector.shape_cast %42 : vector<1xf32> to vector<1x1x1xf32>
    %44 = vector.extract %43[0, 0, 0] : f32 from vector<1x1x1xf32>
    %45 = vector.broadcast %44 : f32 to vector<1x1xf32>
    %46 = arith.addf %40, %45 : vector<1x1xf32>
    %47 = arith.subf %0, %46 : vector<1x1xf32>
    %48 = vector.shape_cast %14 : vector<8x256xf32> to vector<1x8x256xf32>
    %cst_23 = arith.constant dense<0.000000e+00> : vector<1xf32>
    %49 = vector.multi_reduction <add>, %48, %cst_23 [1, 2] : vector<1x8x256xf32> to vector<1xf32>
    %50 = vector.shape_cast %49 : vector<1xf32> to vector<1x1x1xf32>
    %51 = vector.extract %50[0, 0, 0] : f32 from vector<1x1x1xf32>
    %52 = vector.broadcast %51 : f32 to vector<1x1xf32>
    %53 = arith.addf %1, %52 : vector<1x1xf32>
    %54 = arith.subf %8, %9 : vector<2x32xf32>
    %55 = arith.mulf %54, %10 : vector<2x32xf32>
    %56 = math.absf %55 : vector<2x32xf32>
    %cst_24 = arith.constant 1.000000e+00 : f32
    %57 = vector.broadcast %cst_24 : f32 to vector<2x32xf32>
    %58 = arith.cmpf olt, %56, %57 : vector<2x32xf32>
    %cst_25 = arith.constant 5.000000e-01 : f32
    %59 = vector.broadcast %cst_25 : f32 to vector<2x32xf32>
    %60 = arith.mulf %59, %55 : vector<2x32xf32>
    %61 = arith.mulf %60, %55 : vector<2x32xf32>
    %cst_26 = arith.constant 5.000000e-01 : f32
    %62 = vector.broadcast %cst_26 : f32 to vector<2x32xf32>
    %63 = arith.subf %56, %62 : vector<2x32xf32>
    %64 = arith.select %58, %61, %63 : vector<2x32xi1>, vector<2x32xf32>
    %65 = vector.shape_cast %64 : vector<2x32xf32> to vector<1x2x32xf32>
    %cst_27 = arith.constant dense<0.000000e+00> : vector<1xf32>
    %66 = vector.multi_reduction <add>, %65, %cst_27 [1, 2] : vector<1x2x32xf32> to vector<1xf32>
    %67 = vector.shape_cast %66 : vector<1xf32> to vector<1x1x1xf32>
    %68 = vector.extract %67[0, 0, 0] : f32 from vector<1x1x1xf32>
    %69 = vector.broadcast %68 : f32 to vector<1x1xf32>
    %70 = arith.addf %2, %69 : vector<1x1xf32>
    %71 = vector.shape_cast %10 : vector<2x32xf32> to vector<1x2x32xf32>
    %cst_28 = arith.constant dense<0.000000e+00> : vector<1xf32>
    %72 = vector.multi_reduction <add>, %71, %cst_28 [1, 2] : vector<1x2x32xf32> to vector<1xf32>
    %73 = vector.shape_cast %72 : vector<1xf32> to vector<1x1x1xf32>
    %74 = vector.extract %73[0, 0, 0] : f32 from vector<1x1x1xf32>
    %75 = vector.broadcast %74 : f32 to vector<1x1xf32>
    %cst_29 = arith.constant 2.000000e+00 : f32
    %76 = vector.broadcast %cst_29 : f32 to vector<1x1xf32>
    %77 = arith.divf %75, %76 : vector<1x1xf32>
    %78 = arith.addf %3, %77 : vector<1x1xf32>
    %79 = arith.subf %6, %7 : vector<2x32xf32>
    %80 = arith.mulf %79, %10 : vector<2x32xf32>
    %81 = math.absf %80 : vector<2x32xf32>
    %cst_30 = arith.constant 1.000000e+00 : f32
    %82 = vector.broadcast %cst_30 : f32 to vector<2x32xf32>
    %83 = arith.cmpf olt, %81, %82 : vector<2x32xf32>
    %cst_31 = arith.constant 5.000000e-01 : f32
    %84 = vector.broadcast %cst_31 : f32 to vector<2x32xf32>
    %85 = arith.mulf %84, %80 : vector<2x32xf32>
    %86 = arith.mulf %85, %80 : vector<2x32xf32>
    %cst_32 = arith.constant 5.000000e-01 : f32
    %87 = vector.broadcast %cst_32 : f32 to vector<2x32xf32>
    %88 = arith.subf %81, %87 : vector<2x32xf32>
    %89 = arith.select %83, %86, %88 : vector<2x32xi1>, vector<2x32xf32>
    %90 = vector.shape_cast %89 : vector<2x32xf32> to vector<1x2x32xf32>
    %cst_33 = arith.constant dense<0.000000e+00> : vector<1xf32>
    %91 = vector.multi_reduction <add>, %90, %cst_33 [1, 2] : vector<1x2x32xf32> to vector<1xf32>
    %92 = vector.shape_cast %91 : vector<1xf32> to vector<1x1x1xf32>
    %93 = vector.extract %92[0, 0, 0] : f32 from vector<1x1x1xf32>
    %94 = vector.broadcast %93 : f32 to vector<1x1xf32>
    %95 = arith.addf %70, %94 : vector<1x1xf32>
    %96 = vector.shape_cast %10 : vector<2x32xf32> to vector<1x2x32xf32>
    %cst_34 = arith.constant dense<0.000000e+00> : vector<1xf32>
    %97 = vector.multi_reduction <add>, %96, %cst_34 [1, 2] : vector<1x2x32xf32> to vector<1xf32>
    %98 = vector.shape_cast %97 : vector<1xf32> to vector<1x1x1xf32>
    %99 = vector.extract %98[0, 0, 0] : f32 from vector<1x1x1xf32>
    %100 = vector.broadcast %99 : f32 to vector<1x1xf32>
    %cst_35 = arith.constant 2.000000e+00 : f32
    %101 = vector.broadcast %cst_35 : f32 to vector<1x1xf32>
    %102 = arith.divf %100, %101 : vector<1x1xf32>
    %103 = arith.addf %78, %102 : vector<1x1xf32>
    %c0_36 = arith.constant 0 : index
    %c0_37 = arith.constant 0 : index
    %104 = vector.load %arg8[%c0_36, %c0_37] : memref<8x128xf32, #tpu.memory_space<vmem>>, vector<8x128xf32>
    %c0_38 = arith.constant 0 : index
    %c0_39 = arith.constant 0 : index
    %105 = vector.load %arg9[%c0_38, %c0_39] : memref<8x128xf32, #tpu.memory_space<vmem>>, vector<8x128xf32>
    %c0_40 = arith.constant 0 : index
    %c0_41 = arith.constant 0 : index
    %106 = vector.load %arg10[%c0_40, %c0_41] : memref<2x32xf32, #tpu.memory_space<vmem>>, vector<2x32xf32>
    %c0_42 = arith.constant 0 : index
    %c0_43 = arith.constant 0 : index
    %107 = vector.load %arg11[%c0_42, %c0_43] : memref<2x32xf32, #tpu.memory_space<vmem>>, vector<2x32xf32>
    %c0_44 = arith.constant 0 : index
    %c0_45 = arith.constant 0 : index
    %108 = vector.load %arg12[%c0_44, %c0_45] : memref<2x32xf32, #tpu.memory_space<vmem>>, vector<2x32xf32>
    %c0_46 = arith.constant 0 : index
    %c0_47 = arith.constant 0 : index
    %109 = vector.load %arg13[%c0_46, %c0_47] : memref<2x32xf32, #tpu.memory_space<vmem>>, vector<2x32xf32>
    %c0_48 = arith.constant 0 : index
    %c0_49 = arith.constant 0 : index
    %110 = vector.load %arg14[%c0_48, %c0_49] : memref<2x32xf32, #tpu.memory_space<vmem>>, vector<2x32xf32>
    %cst_50 = arith.constant 1.000000e+00 : f32
    %111 = vector.broadcast %cst_50 : f32 to vector<8x128xf32>
    %112 = arith.cmpf oeq, %105, %111 : vector<8x128xf32>
    %113 = arith.extui %112 : vector<8x128xi1> to vector<8x128xi32>
    %114 = arith.sitofp %113 : vector<8x128xi32> to vector<8x128xf32>
    %cst_51 = arith.constant 1.000000e+00 : f32
    %115 = vector.broadcast %cst_51 : f32 to vector<8x128xf32>
    %116 = arith.cmpf olt, %105, %115 : vector<8x128xf32>
    %117 = arith.extui %116 : vector<8x128xi1> to vector<8x128xi32>
    %118 = arith.sitofp %117 : vector<8x128xi32> to vector<8x128xf32>
    %cst_52 = arith.constant 1.000000e+00 : f32
    %119 = vector.broadcast %cst_52 : f32 to vector<8x128xf32>
    %120 = arith.subf %119, %105 : vector<8x128xf32>
    %121 = arith.mulf %120, %120 : vector<8x128xf32>
    %122 = arith.mulf %121, %121 : vector<8x128xf32>
    %123 = math.log %104 : vector<8x128xf32>
    %cst_53 = arith.constant 1.000000e+00 : f32
    %124 = vector.broadcast %cst_53 : f32 to vector<8x128xf32>
    %125 = arith.subf %124, %104 : vector<8x128xf32>
    %126 = arith.mulf %125, %125 : vector<8x128xf32>
    %127 = arith.mulf %123, %126 : vector<8x128xf32>
    %128 = arith.mulf %127, %114 : vector<8x128xf32>
    %cst_54 = arith.constant 1.000000e+00 : f32
    %129 = vector.broadcast %cst_54 : f32 to vector<8x128xf32>
    %130 = arith.subf %129, %104 : vector<8x128xf32>
    %131 = math.log %130 : vector<8x128xf32>
    %132 = arith.mulf %104, %104 : vector<8x128xf32>
    %133 = arith.mulf %131, %132 : vector<8x128xf32>
    %134 = arith.mulf %133, %122 : vector<8x128xf32>
    %135 = arith.mulf %134, %118 : vector<8x128xf32>
    %136 = vector.shape_cast %128 : vector<8x128xf32> to vector<1x8x128xf32>
    %cst_55 = arith.constant dense<0.000000e+00> : vector<1xf32>
    %137 = vector.multi_reduction <add>, %136, %cst_55 [1, 2] : vector<1x8x128xf32> to vector<1xf32>
    %138 = vector.shape_cast %137 : vector<1xf32> to vector<1x1x1xf32>
    %139 = vector.extract %138[0, 0, 0] : f32 from vector<1x1x1xf32>
    %140 = vector.broadcast %139 : f32 to vector<1x1xf32>
    %141 = vector.shape_cast %135 : vector<8x128xf32> to vector<1x8x128xf32>
    %cst_56 = arith.constant dense<0.000000e+00> : vector<1xf32>
    %142 = vector.multi_reduction <add>, %141, %cst_56 [1, 2] : vector<1x8x128xf32> to vector<1xf32>
    %143 = vector.shape_cast %142 : vector<1xf32> to vector<1x1x1xf32>
    %144 = vector.extract %143[0, 0, 0] : f32 from vector<1x1x1xf32>
    %145 = vector.broadcast %144 : f32 to vector<1x1xf32>
    %146 = arith.addf %140, %145 : vector<1x1xf32>
    %147 = arith.subf %47, %146 : vector<1x1xf32>
    %148 = vector.shape_cast %114 : vector<8x128xf32> to vector<1x8x128xf32>
    %cst_57 = arith.constant dense<0.000000e+00> : vector<1xf32>
    %149 = vector.multi_reduction <add>, %148, %cst_57 [1, 2] : vector<1x8x128xf32> to vector<1xf32>
    %150 = vector.shape_cast %149 : vector<1xf32> to vector<1x1x1xf32>
    %151 = vector.extract %150[0, 0, 0] : f32 from vector<1x1x1xf32>
    %152 = vector.broadcast %151 : f32 to vector<1x1xf32>
    %153 = arith.addf %53, %152 : vector<1x1xf32>
    %154 = arith.subf %108, %109 : vector<2x32xf32>
    %155 = arith.mulf %154, %110 : vector<2x32xf32>
    %156 = math.absf %155 : vector<2x32xf32>
    %cst_58 = arith.constant 1.000000e+00 : f32
    %157 = vector.broadcast %cst_58 : f32 to vector<2x32xf32>
    %158 = arith.cmpf olt, %156, %157 : vector<2x32xf32>
    %cst_59 = arith.constant 5.000000e-01 : f32
    %159 = vector.broadcast %cst_59 : f32 to vector<2x32xf32>
    %160 = arith.mulf %159, %155 : vector<2x32xf32>
    %161 = arith.mulf %160, %155 : vector<2x32xf32>
    %cst_60 = arith.constant 5.000000e-01 : f32
    %162 = vector.broadcast %cst_60 : f32 to vector<2x32xf32>
    %163 = arith.subf %156, %162 : vector<2x32xf32>
    %164 = arith.select %158, %161, %163 : vector<2x32xi1>, vector<2x32xf32>
    %165 = vector.shape_cast %164 : vector<2x32xf32> to vector<1x2x32xf32>
    %cst_61 = arith.constant dense<0.000000e+00> : vector<1xf32>
    %166 = vector.multi_reduction <add>, %165, %cst_61 [1, 2] : vector<1x2x32xf32> to vector<1xf32>
    %167 = vector.shape_cast %166 : vector<1xf32> to vector<1x1x1xf32>
    %168 = vector.extract %167[0, 0, 0] : f32 from vector<1x1x1xf32>
    %169 = vector.broadcast %168 : f32 to vector<1x1xf32>
    %170 = arith.addf %95, %169 : vector<1x1xf32>
    %171 = vector.shape_cast %110 : vector<2x32xf32> to vector<1x2x32xf32>
    %cst_62 = arith.constant dense<0.000000e+00> : vector<1xf32>
    %172 = vector.multi_reduction <add>, %171, %cst_62 [1, 2] : vector<1x2x32xf32> to vector<1xf32>
    %173 = vector.shape_cast %172 : vector<1xf32> to vector<1x1x1xf32>
    %174 = vector.extract %173[0, 0, 0] : f32 from vector<1x1x1xf32>
    %175 = vector.broadcast %174 : f32 to vector<1x1xf32>
    %cst_63 = arith.constant 2.000000e+00 : f32
    %176 = vector.broadcast %cst_63 : f32 to vector<1x1xf32>
    %177 = arith.divf %175, %176 : vector<1x1xf32>
    %178 = arith.addf %103, %177 : vector<1x1xf32>
    %179 = arith.subf %106, %107 : vector<2x32xf32>
    %180 = arith.mulf %179, %110 : vector<2x32xf32>
    %181 = math.absf %180 : vector<2x32xf32>
    %cst_64 = arith.constant 1.000000e+00 : f32
    %182 = vector.broadcast %cst_64 : f32 to vector<2x32xf32>
    %183 = arith.cmpf olt, %181, %182 : vector<2x32xf32>
    %cst_65 = arith.constant 5.000000e-01 : f32
    %184 = vector.broadcast %cst_65 : f32 to vector<2x32xf32>
    %185 = arith.mulf %184, %180 : vector<2x32xf32>
    %186 = arith.mulf %185, %180 : vector<2x32xf32>
    %cst_66 = arith.constant 5.000000e-01 : f32
    %187 = vector.broadcast %cst_66 : f32 to vector<2x32xf32>
    %188 = arith.subf %181, %187 : vector<2x32xf32>
    %189 = arith.select %183, %186, %188 : vector<2x32xi1>, vector<2x32xf32>
    %190 = vector.shape_cast %189 : vector<2x32xf32> to vector<1x2x32xf32>
    %cst_67 = arith.constant dense<0.000000e+00> : vector<1xf32>
    %191 = vector.multi_reduction <add>, %190, %cst_67 [1, 2] : vector<1x2x32xf32> to vector<1xf32>
    %192 = vector.shape_cast %191 : vector<1xf32> to vector<1x1x1xf32>
    %193 = vector.extract %192[0, 0, 0] : f32 from vector<1x1x1xf32>
    %194 = vector.broadcast %193 : f32 to vector<1x1xf32>
    %195 = arith.addf %170, %194 : vector<1x1xf32>
    %196 = vector.shape_cast %110 : vector<2x32xf32> to vector<1x2x32xf32>
    %cst_68 = arith.constant dense<0.000000e+00> : vector<1xf32>
    %197 = vector.multi_reduction <add>, %196, %cst_68 [1, 2] : vector<1x2x32xf32> to vector<1xf32>
    %198 = vector.shape_cast %197 : vector<1xf32> to vector<1x1x1xf32>
    %199 = vector.extract %198[0, 0, 0] : f32 from vector<1x1x1xf32>
    %200 = vector.broadcast %199 : f32 to vector<1x1xf32>
    %cst_69 = arith.constant 2.000000e+00 : f32
    %201 = vector.broadcast %cst_69 : f32 to vector<1x1xf32>
    %202 = arith.divf %200, %201 : vector<1x1xf32>
    %203 = arith.addf %178, %202 : vector<1x1xf32>
    %c0_70 = arith.constant 0 : index
    %c0_71 = arith.constant 0 : index
    %204 = vector.load %arg15[%c0_70, %c0_71] : memref<8x64xf32, #tpu.memory_space<vmem>>, vector<8x64xf32>
    %c0_72 = arith.constant 0 : index
    %c0_73 = arith.constant 0 : index
    %205 = vector.load %arg16[%c0_72, %c0_73] : memref<8x64xf32, #tpu.memory_space<vmem>>, vector<8x64xf32>
    %c0_74 = arith.constant 0 : index
    %c0_75 = arith.constant 0 : index
    %206 = vector.load %arg17[%c0_74, %c0_75] : memref<2x32xf32, #tpu.memory_space<vmem>>, vector<2x32xf32>
    %c0_76 = arith.constant 0 : index
    %c0_77 = arith.constant 0 : index
    %207 = vector.load %arg18[%c0_76, %c0_77] : memref<2x32xf32, #tpu.memory_space<vmem>>, vector<2x32xf32>
    %c0_78 = arith.constant 0 : index
    %c0_79 = arith.constant 0 : index
    %208 = vector.load %arg19[%c0_78, %c0_79] : memref<2x32xf32, #tpu.memory_space<vmem>>, vector<2x32xf32>
    %c0_80 = arith.constant 0 : index
    %c0_81 = arith.constant 0 : index
    %209 = vector.load %arg20[%c0_80, %c0_81] : memref<2x32xf32, #tpu.memory_space<vmem>>, vector<2x32xf32>
    %c0_82 = arith.constant 0 : index
    %c0_83 = arith.constant 0 : index
    %210 = vector.load %arg21[%c0_82, %c0_83] : memref<2x32xf32, #tpu.memory_space<vmem>>, vector<2x32xf32>
    %cst_84 = arith.constant 1.000000e+00 : f32
    %211 = vector.broadcast %cst_84 : f32 to vector<8x64xf32>
    %212 = arith.cmpf oeq, %205, %211 : vector<8x64xf32>
    %213 = arith.extui %212 : vector<8x64xi1> to vector<8x64xi32>
    %214 = arith.sitofp %213 : vector<8x64xi32> to vector<8x64xf32>
    %cst_85 = arith.constant 1.000000e+00 : f32
    %215 = vector.broadcast %cst_85 : f32 to vector<8x64xf32>
    %216 = arith.cmpf olt, %205, %215 : vector<8x64xf32>
    %217 = arith.extui %216 : vector<8x64xi1> to vector<8x64xi32>
    %218 = arith.sitofp %217 : vector<8x64xi32> to vector<8x64xf32>
    %cst_86 = arith.constant 1.000000e+00 : f32
    %219 = vector.broadcast %cst_86 : f32 to vector<8x64xf32>
    %220 = arith.subf %219, %205 : vector<8x64xf32>
    %221 = arith.mulf %220, %220 : vector<8x64xf32>
    %222 = arith.mulf %221, %221 : vector<8x64xf32>
    %223 = math.log %204 : vector<8x64xf32>
    %cst_87 = arith.constant 1.000000e+00 : f32
    %224 = vector.broadcast %cst_87 : f32 to vector<8x64xf32>
    %225 = arith.subf %224, %204 : vector<8x64xf32>
    %226 = arith.mulf %225, %225 : vector<8x64xf32>
    %227 = arith.mulf %223, %226 : vector<8x64xf32>
    %228 = arith.mulf %227, %214 : vector<8x64xf32>
    %cst_88 = arith.constant 1.000000e+00 : f32
    %229 = vector.broadcast %cst_88 : f32 to vector<8x64xf32>
    %230 = arith.subf %229, %204 : vector<8x64xf32>
    %231 = math.log %230 : vector<8x64xf32>
    %232 = arith.mulf %204, %204 : vector<8x64xf32>
    %233 = arith.mulf %231, %232 : vector<8x64xf32>
    %234 = arith.mulf %233, %222 : vector<8x64xf32>
    %235 = arith.mulf %234, %218 : vector<8x64xf32>
    %236 = vector.shape_cast %228 : vector<8x64xf32> to vector<1x8x64xf32>
    %cst_89 = arith.constant dense<0.000000e+00> : vector<1xf32>
    %237 = vector.multi_reduction <add>, %236, %cst_89 [1, 2] : vector<1x8x64xf32> to vector<1xf32>
    %238 = vector.shape_cast %237 : vector<1xf32> to vector<1x1x1xf32>
    %239 = vector.extract %238[0, 0, 0] : f32 from vector<1x1x1xf32>
    %240 = vector.broadcast %239 : f32 to vector<1x1xf32>
    %241 = vector.shape_cast %235 : vector<8x64xf32> to vector<1x8x64xf32>
    %cst_90 = arith.constant dense<0.000000e+00> : vector<1xf32>
    %242 = vector.multi_reduction <add>, %241, %cst_90 [1, 2] : vector<1x8x64xf32> to vector<1xf32>
    %243 = vector.shape_cast %242 : vector<1xf32> to vector<1x1x1xf32>
    %244 = vector.extract %243[0, 0, 0] : f32 from vector<1x1x1xf32>
    %245 = vector.broadcast %244 : f32 to vector<1x1xf32>
    %246 = arith.addf %240, %245 : vector<1x1xf32>
    %247 = arith.subf %147, %246 : vector<1x1xf32>
    %248 = vector.shape_cast %214 : vector<8x64xf32> to vector<1x8x64xf32>
    %cst_91 = arith.constant dense<0.000000e+00> : vector<1xf32>
    %249 = vector.multi_reduction <add>, %248, %cst_91 [1, 2] : vector<1x8x64xf32> to vector<1xf32>
    %250 = vector.shape_cast %249 : vector<1xf32> to vector<1x1x1xf32>
    %251 = vector.extract %250[0, 0, 0] : f32 from vector<1x1x1xf32>
    %252 = vector.broadcast %251 : f32 to vector<1x1xf32>
    %253 = arith.addf %153, %252 : vector<1x1xf32>
    %254 = arith.subf %208, %209 : vector<2x32xf32>
    %255 = arith.mulf %254, %210 : vector<2x32xf32>
    %256 = math.absf %255 : vector<2x32xf32>
    %cst_92 = arith.constant 1.000000e+00 : f32
    %257 = vector.broadcast %cst_92 : f32 to vector<2x32xf32>
    %258 = arith.cmpf olt, %256, %257 : vector<2x32xf32>
    %cst_93 = arith.constant 5.000000e-01 : f32
    %259 = vector.broadcast %cst_93 : f32 to vector<2x32xf32>
    %260 = arith.mulf %259, %255 : vector<2x32xf32>
    %261 = arith.mulf %260, %255 : vector<2x32xf32>
    %cst_94 = arith.constant 5.000000e-01 : f32
    %262 = vector.broadcast %cst_94 : f32 to vector<2x32xf32>
    %263 = arith.subf %256, %262 : vector<2x32xf32>
    %264 = arith.select %258, %261, %263 : vector<2x32xi1>, vector<2x32xf32>
    %265 = vector.shape_cast %264 : vector<2x32xf32> to vector<1x2x32xf32>
    %cst_95 = arith.constant dense<0.000000e+00> : vector<1xf32>
    %266 = vector.multi_reduction <add>, %265, %cst_95 [1, 2] : vector<1x2x32xf32> to vector<1xf32>
    %267 = vector.shape_cast %266 : vector<1xf32> to vector<1x1x1xf32>
    %268 = vector.extract %267[0, 0, 0] : f32 from vector<1x1x1xf32>
    %269 = vector.broadcast %268 : f32 to vector<1x1xf32>
    %270 = arith.addf %195, %269 : vector<1x1xf32>
    %271 = vector.shape_cast %210 : vector<2x32xf32> to vector<1x2x32xf32>
    %cst_96 = arith.constant dense<0.000000e+00> : vector<1xf32>
    %272 = vector.multi_reduction <add>, %271, %cst_96 [1, 2] : vector<1x2x32xf32> to vector<1xf32>
    %273 = vector.shape_cast %272 : vector<1xf32> to vector<1x1x1xf32>
    %274 = vector.extract %273[0, 0, 0] : f32 from vector<1x1x1xf32>
    %275 = vector.broadcast %274 : f32 to vector<1x1xf32>
    %cst_97 = arith.constant 2.000000e+00 : f32
    %276 = vector.broadcast %cst_97 : f32 to vector<1x1xf32>
    %277 = arith.divf %275, %276 : vector<1x1xf32>
    %278 = arith.addf %203, %277 : vector<1x1xf32>
    %279 = arith.subf %206, %207 : vector<2x32xf32>
    %280 = arith.mulf %279, %210 : vector<2x32xf32>
    %281 = math.absf %280 : vector<2x32xf32>
    %cst_98 = arith.constant 1.000000e+00 : f32
    %282 = vector.broadcast %cst_98 : f32 to vector<2x32xf32>
    %283 = arith.cmpf olt, %281, %282 : vector<2x32xf32>
    %cst_99 = arith.constant 5.000000e-01 : f32
    %284 = vector.broadcast %cst_99 : f32 to vector<2x32xf32>
    %285 = arith.mulf %284, %280 : vector<2x32xf32>
    %286 = arith.mulf %285, %280 : vector<2x32xf32>
    %cst_100 = arith.constant 5.000000e-01 : f32
    %287 = vector.broadcast %cst_100 : f32 to vector<2x32xf32>
    %288 = arith.subf %281, %287 : vector<2x32xf32>
    %289 = arith.select %283, %286, %288 : vector<2x32xi1>, vector<2x32xf32>
    %290 = vector.shape_cast %289 : vector<2x32xf32> to vector<1x2x32xf32>
    %cst_101 = arith.constant dense<0.000000e+00> : vector<1xf32>
    %291 = vector.multi_reduction <add>, %290, %cst_101 [1, 2] : vector<1x2x32xf32> to vector<1xf32>
    %292 = vector.shape_cast %291 : vector<1xf32> to vector<1x1x1xf32>
    %293 = vector.extract %292[0, 0, 0] : f32 from vector<1x1x1xf32>
    %294 = vector.broadcast %293 : f32 to vector<1x1xf32>
    %295 = arith.addf %270, %294 : vector<1x1xf32>
    %296 = vector.shape_cast %210 : vector<2x32xf32> to vector<1x2x32xf32>
    %cst_102 = arith.constant dense<0.000000e+00> : vector<1xf32>
    %297 = vector.multi_reduction <add>, %296, %cst_102 [1, 2] : vector<1x2x32xf32> to vector<1xf32>
    %298 = vector.shape_cast %297 : vector<1xf32> to vector<1x1x1xf32>
    %299 = vector.extract %298[0, 0, 0] : f32 from vector<1x1x1xf32>
    %300 = vector.broadcast %299 : f32 to vector<1x1xf32>
    %cst_103 = arith.constant 2.000000e+00 : f32
    %301 = vector.broadcast %cst_103 : f32 to vector<1x1xf32>
    %302 = arith.divf %300, %301 : vector<1x1xf32>
    %303 = arith.addf %278, %302 : vector<1x1xf32>
    %c0_104 = arith.constant 0 : index
    %c0_105 = arith.constant 0 : index
    %304 = vector.load %arg22[%c0_104, %c0_105] : memref<2x64xf32, #tpu.memory_space<vmem>>, vector<2x64xf32>
    %c0_106 = arith.constant 0 : index
    %c0_107 = arith.constant 0 : index
    %305 = vector.load %arg23[%c0_106, %c0_107] : memref<2x64xf32, #tpu.memory_space<vmem>>, vector<2x64xf32>
    %c0_108 = arith.constant 0 : index
    %c0_109 = arith.constant 0 : index
    %306 = vector.load %arg24[%c0_108, %c0_109] : memref<2x64xf32, #tpu.memory_space<vmem>>, vector<2x64xf32>
    %c0_110 = arith.constant 0 : index
    %c0_111 = arith.constant 0 : index
    %307 = vector.load %arg25[%c0_110, %c0_111] : memref<2x64xf32, #tpu.memory_space<vmem>>, vector<2x64xf32>
    %c0_112 = arith.constant 0 : index
    %c0_113 = arith.constant 0 : index
    %308 = vector.load %arg26[%c0_112, %c0_113] : memref<2x64xf32, #tpu.memory_space<vmem>>, vector<2x64xf32>
    %c0_114 = arith.constant 0 : index
    %c0_115 = arith.constant 0 : index
    %309 = vector.load %arg27[%c0_114, %c0_115] : memref<2x64xf32, #tpu.memory_space<vmem>>, vector<2x64xf32>
    %c0_116 = arith.constant 0 : index
    %c0_117 = arith.constant 0 : index
    %310 = vector.load %arg28[%c0_116, %c0_117] : memref<2x64xf32, #tpu.memory_space<vmem>>, vector<2x64xf32>
    %c0_118 = arith.constant 0 : index
    %c0_119 = arith.constant 0 : index
    %311 = vector.load %arg29[%c0_118, %c0_119] : memref<2x64xf32, #tpu.memory_space<vmem>>, vector<2x64xf32>
    %c0_120 = arith.constant 0 : index
    %c0_121 = arith.constant 0 : index
    %312 = vector.load %arg30[%c0_120, %c0_121] : memref<64x8xf32, #tpu.memory_space<vmem>>, vector<64x8xf32>
    %c0_122 = arith.constant 0 : index
    %c0_123 = arith.constant 0 : index
    %313 = vector.load %arg31[%c0_122, %c0_123] : memref<64x1xi32, #tpu.memory_space<vmem>>, vector<64x1xi32>
    %cst_124 = arith.constant 0.000000e+00 : f32
    %314 = vector.broadcast %cst_124 : f32 to vector<1x1xf32>
    %315 = arith.subf %304, %305 : vector<2x64xf32>
    %316 = arith.mulf %306, %315 : vector<2x64xf32>
    %317 = math.absf %316 : vector<2x64xf32>
    %cst_125 = arith.constant 1.000000e+00 : f32
    %318 = vector.broadcast %cst_125 : f32 to vector<2x64xf32>
    %319 = arith.cmpf olt, %317, %318 : vector<2x64xf32>
    %cst_126 = arith.constant 5.000000e-01 : f32
    %320 = vector.broadcast %cst_126 : f32 to vector<2x64xf32>
    %321 = arith.mulf %320, %316 : vector<2x64xf32>
    %322 = arith.mulf %321, %316 : vector<2x64xf32>
    %cst_127 = arith.constant 5.000000e-01 : f32
    %323 = vector.broadcast %cst_127 : f32 to vector<2x64xf32>
    %324 = arith.subf %317, %323 : vector<2x64xf32>
    %325 = arith.select %319, %322, %324 : vector<2x64xi1>, vector<2x64xf32>
    %326 = arith.mulf %307, %325 : vector<2x64xf32>
    %327 = vector.shape_cast %326 : vector<2x64xf32> to vector<1x2x64xf32>
    %cst_128 = arith.constant dense<0.000000e+00> : vector<1xf32>
    %328 = vector.multi_reduction <add>, %327, %cst_128 [1, 2] : vector<1x2x64xf32> to vector<1xf32>
    %329 = vector.shape_cast %328 : vector<1xf32> to vector<1x1x1xf32>
    %330 = vector.extract %329[0, 0, 0] : f32 from vector<1x1x1xf32>
    %331 = vector.broadcast %330 : f32 to vector<1x1xf32>
    %332 = arith.addf %314, %331 : vector<1x1xf32>
    %333 = arith.subf %308, %309 : vector<2x64xf32>
    %334 = arith.mulf %310, %333 : vector<2x64xf32>
    %335 = math.absf %334 : vector<2x64xf32>
    %cst_129 = arith.constant 1.000000e+00 : f32
    %336 = vector.broadcast %cst_129 : f32 to vector<2x64xf32>
    %337 = arith.cmpf olt, %335, %336 : vector<2x64xf32>
    %cst_130 = arith.constant 5.000000e-01 : f32
    %338 = vector.broadcast %cst_130 : f32 to vector<2x64xf32>
    %339 = arith.mulf %338, %334 : vector<2x64xf32>
    %340 = arith.mulf %339, %334 : vector<2x64xf32>
    %cst_131 = arith.constant 5.000000e-01 : f32
    %341 = vector.broadcast %cst_131 : f32 to vector<2x64xf32>
    %342 = arith.subf %335, %341 : vector<2x64xf32>
    %343 = arith.select %337, %340, %342 : vector<2x64xi1>, vector<2x64xf32>
    %344 = arith.mulf %311, %343 : vector<2x64xf32>
    %345 = vector.shape_cast %344 : vector<2x64xf32> to vector<1x2x64xf32>
    %cst_132 = arith.constant dense<0.000000e+00> : vector<1xf32>
    %346 = vector.multi_reduction <add>, %345, %cst_132 [1, 2] : vector<1x2x64xf32> to vector<1xf32>
    %347 = vector.shape_cast %346 : vector<1xf32> to vector<1x1x1xf32>
    %348 = vector.extract %347[0, 0, 0] : f32 from vector<1x1x1xf32>
    %349 = vector.broadcast %348 : f32 to vector<1x1xf32>
    %350 = arith.addf %332, %349 : vector<1x1xf32>
    %cst_133 = arith.constant 8.000000e+00 : f32
    %351 = vector.broadcast %cst_133 : f32 to vector<1x1xf32>
    %352 = arith.divf %350, %351 : vector<1x1xf32>
    %cst_134 = arith.constant dense<0xFF800000> : vector<64xf32>
    %353 = vector.multi_reduction <maximumf>, %312, %cst_134 [1] : vector<64x8xf32> to vector<64xf32>
    %354 = vector.shape_cast %353 : vector<64xf32> to vector<64x1xf32>
    %355 = vector.broadcast %354 : vector<64x1xf32> to vector<64x8xf32>
    %356 = arith.subf %312, %355 : vector<64x8xf32>
    %357 = math.exp %356 : vector<64x8xf32>
    %cst_135 = arith.constant dense<0.000000e+00> : vector<64xf32>
    %358 = vector.multi_reduction <add>, %357, %cst_135 [1] : vector<64x8xf32> to vector<64xf32>
    %359 = vector.shape_cast %358 : vector<64xf32> to vector<64x1xf32>
    %360 = math.log %359 : vector<64x1xf32>
    %361 = arith.addf %360, %354 : vector<64x1xf32>
    %362 = tpu.iota {dimensions = array<i32: 1>} : vector<64x8xi32>
    %363 = vector.broadcast %313 : vector<64x1xi32> to vector<64x8xi32>
    %364 = arith.cmpi eq, %362, %363 : vector<64x8xi32>
    %365 = arith.extui %364 : vector<64x8xi1> to vector<64x8xi32>
    %366 = arith.sitofp %365 : vector<64x8xi32> to vector<64x8xf32>
    %367 = arith.mulf %312, %366 : vector<64x8xf32>
    %cst_136 = arith.constant dense<0.000000e+00> : vector<64xf32>
    %368 = vector.multi_reduction <add>, %367, %cst_136 [1] : vector<64x8xf32> to vector<64xf32>
    %369 = vector.shape_cast %368 : vector<64xf32> to vector<64x1xf32>
    %370 = arith.subf %361, %369 : vector<64x1xf32>
    %371 = vector.shape_cast %370 : vector<64x1xf32> to vector<1x64x1xf32>
    %cst_137 = arith.constant dense<0.000000e+00> : vector<1xf32>
    %372 = vector.multi_reduction <add>, %371, %cst_137 [1, 2] : vector<1x64x1xf32> to vector<1xf32>
    %373 = vector.shape_cast %372 : vector<1xf32> to vector<1x1x1xf32>
    %374 = vector.extract %373[0, 0, 0] : f32 from vector<1x1x1xf32>
    %375 = vector.broadcast %374 : f32 to vector<1x1xf32>
    %cst_138 = arith.constant 6.400000e+01 : f32
    %376 = vector.broadcast %cst_138 : f32 to vector<1x1xf32>
    %377 = arith.divf %375, %376 : vector<1x1xf32>
    %cst_139 = arith.constant 0.000000e+00 : f32
    %378 = vector.broadcast %cst_139 : f32 to vector<1x1xf32>
    %379 = arith.cmpf ogt, %253, %378 : vector<1x1xf32>
    %cst_140 = arith.constant 1.000000e+00 : f32
    %380 = vector.broadcast %cst_140 : f32 to vector<1x1xf32>
    %381 = arith.maximumf %253, %380 : vector<1x1xf32>
    %382 = arith.divf %247, %381 : vector<1x1xf32>
    %383 = arith.select %379, %382, %247 : vector<1x1xi1>, vector<1x1xf32>
    %cst_141 = arith.constant 0.000000e+00 : f32
    %384 = vector.broadcast %cst_141 : f32 to vector<1x1xf32>
    %385 = arith.cmpf ogt, %303, %384 : vector<1x1xf32>
    %cst_142 = arith.constant 1.000000e+00 : f32
    %386 = vector.broadcast %cst_142 : f32 to vector<1x1xf32>
    %387 = arith.maximumf %303, %386 : vector<1x1xf32>
    %388 = arith.divf %295, %387 : vector<1x1xf32>
    %389 = arith.select %385, %388, %295 : vector<1x1xi1>, vector<1x1xf32>
    %390 = arith.addf %383, %389 : vector<1x1xf32>
    %391 = arith.addf %390, %352 : vector<1x1xf32>
    %392 = arith.addf %391, %377 : vector<1x1xf32>
    %393 = vector.shape_cast %392 : vector<1x1xf32> to vector<1x1xf32>
    %394 = vector.broadcast %393 : vector<1x1xf32> to vector<8x128xf32>
    %c0_143 = arith.constant 0 : index
    %c0_144 = arith.constant 0 : index
    %395 = vector.load %arg32[%c0_143, %c0_144] : memref<8x128xf32, #tpu.memory_space<vmem>>, vector<8x128xf32>
    tpu.vector_store %arg32[%c0_143, %c0_144], %394 {strides = array<i32>} : memref<8x128xf32, #tpu.memory_space<vmem>>, vector<8x128xf32>,
    return
  }
  func.func @transform_0(%arg0: i32) -> (i32, i32) {
    %c0_i32 = arith.constant 0 : i32
    %c0_i32_0 = arith.constant 0 : i32
    %c0_i32_1 = arith.constant 0 : i32
    return %c0_i32, %c0_i32_0 : i32, i32
  }
  func.func @transform_1(%arg0: i32) -> (i32, i32) {
    %c0_i32 = arith.constant 0 : i32
    %c0_i32_0 = arith.constant 0 : i32
    %c0_i32_1 = arith.constant 0 : i32
    return %c0_i32, %c0_i32_0 : i32, i32
  }
  func.func @transform_2(%arg0: i32) -> (i32, i32) {
    %c0_i32 = arith.constant 0 : i32
    %c0_i32_0 = arith.constant 0 : i32
    %c0_i32_1 = arith.constant 0 : i32
    return %c0_i32, %c0_i32_0 : i32, i32
  }
  func.func @transform_3(%arg0: i32) -> (i32, i32) {
    %c0_i32 = arith.constant 0 : i32
    %c0_i32_0 = arith.constant 0 : i32
    %c0_i32_1 = arith.constant 0 : i32
    return %c0_i32, %c0_i32_0 : i32, i32
  }
  func.func @transform_4(%arg0: i32) -> (i32, i32) {
    %c0_i32 = arith.constant 0 : i32
    %c0_i32_0 = arith.constant 0 : i32
    %c0_i32_1 = arith.constant 0 : i32
    return %c0_i32, %c0_i32_0 : i32, i32
  }
  func.func @transform_5(%arg0: i32) -> (i32, i32) {
    %c0_i32 = arith.constant 0 : i32
    %c0_i32_0 = arith.constant 0 : i32
    %c0_i32_1 = arith.constant 0 : i32
    return %c0_i32, %c0_i32_0 : i32, i32
  }
  func.func @transform_6(%arg0: i32) -> (i32, i32) {
    %c0_i32 = arith.constant 0 : i32
    %c0_i32_0 = arith.constant 0 : i32
    %c0_i32_1 = arith.constant 0 : i32
    return %c0_i32, %c0_i32_0 : i32, i32
  }
  func.func @transform_7(%arg0: i32) -> (i32, i32) {
    %c0_i32 = arith.constant 0 : i32
    %c0_i32_0 = arith.constant 0 : i32
    %c0_i32_1 = arith.constant 0 : i32
    return %c0_i32, %c0_i32_0 : i32, i32
  }
  func.func @transform_8(%arg0: i32) -> (i32, i32) {
    %c0_i32 = arith.constant 0 : i32
    %c0_i32_0 = arith.constant 0 : i32
    %c0_i32_1 = arith.constant 0 : i32
    return %c0_i32, %c0_i32_0 : i32, i32
  }
  func.func @transform_9(%arg0: i32) -> (i32, i32) {
    %c0_i32 = arith.constant 0 : i32
    %c0_i32_0 = arith.constant 0 : i32
    %c0_i32_1 = arith.constant 0 : i32
    return %c0_i32, %c0_i32_0 : i32, i32
  }
  func.func @transform_10(%arg0: i32) -> (i32, i32) {
    %c0_i32 = arith.constant 0 : i32
    %c0_i32_0 = arith.constant 0 : i32
    %c0_i32_1 = arith.constant 0 : i32
    return %c0_i32, %c0_i32_0 : i32, i32
  }
  func.func @transform_11(%arg0: i32) -> (i32, i32) {
    %c0_i32 = arith.constant 0 : i32
    %c0_i32_0 = arith.constant 0 : i32
    %c0_i32_1 = arith.constant 0 : i32
    return %c0_i32, %c0_i32_0 : i32, i32
  }
  func.func @transform_12(%arg0: i32) -> (i32, i32) {
    %c0_i32 = arith.constant 0 : i32
    %c0_i32_0 = arith.constant 0 : i32
    %c0_i32_1 = arith.constant 0 : i32
    return %c0_i32, %c0_i32_0 : i32, i32
  }
  func.func @transform_13(%arg0: i32) -> (i32, i32) {
    %c0_i32 = arith.constant 0 : i32
    %c0_i32_0 = arith.constant 0 : i32
    %c0_i32_1 = arith.constant 0 : i32
    return %c0_i32, %c0_i32_0 : i32, i32
  }
  func.func @transform_14(%arg0: i32) -> (i32, i32) {
    %c0_i32 = arith.constant 0 : i32
    %c0_i32_0 = arith.constant 0 : i32
    %c0_i32_1 = arith.constant 0 : i32
    return %c0_i32, %c0_i32_0 : i32, i32
  }
  func.func @transform_15(%arg0: i32) -> (i32, i32) {
    %c0_i32 = arith.constant 0 : i32
    %c0_i32_0 = arith.constant 0 : i32
    %c0_i32_1 = arith.constant 0 : i32
    return %c0_i32, %c0_i32_0 : i32, i32
  }
  func.func @transform_16(%arg0: i32) -> (i32, i32) {
    %c0_i32 = arith.constant 0 : i32
    %c0_i32_0 = arith.constant 0 : i32
    %c0_i32_1 = arith.constant 0 : i32
    return %c0_i32, %c0_i32_0 : i32, i32
  }
  func.func @transform_17(%arg0: i32) -> (i32, i32) {
    %c0_i32 = arith.constant 0 : i32
    %c0_i32_0 = arith.constant 0 : i32
    %c0_i32_1 = arith.constant 0 : i32
    return %c0_i32, %c0_i32_0 : i32, i32
  }
  func.func @transform_18(%arg0: i32) -> (i32, i32) {
    %c0_i32 = arith.constant 0 : i32
    %c0_i32_0 = arith.constant 0 : i32
    %c0_i32_1 = arith.constant 0 : i32
    return %c0_i32, %c0_i32_0 : i32, i32
  }
  func.func @transform_19(%arg0: i32) -> (i32, i32) {
    %c0_i32 = arith.constant 0 : i32
    %c0_i32_0 = arith.constant 0 : i32
    %c0_i32_1 = arith.constant 0 : i32
    return %c0_i32, %c0_i32_0 : i32, i32
  }
  func.func @transform_20(%arg0: i32) -> (i32, i32) {
    %c0_i32 = arith.constant 0 : i32
    %c0_i32_0 = arith.constant 0 : i32
    %c0_i32_1 = arith.constant 0 : i32
    return %c0_i32, %c0_i32_0 : i32, i32
  }
  func.func @transform_21(%arg0: i32) -> (i32, i32) {
    %c0_i32 = arith.constant 0 : i32
    %c0_i32_0 = arith.constant 0 : i32
    %c0_i32_1 = arith.constant 0 : i32
    return %c0_i32, %c0_i32_0 : i32, i32
  }
  func.func @transform_22(%arg0: i32) -> (i32, i32) {
    %c0_i32 = arith.constant 0 : i32
    %c0_i32_0 = arith.constant 0 : i32
    %c0_i32_1 = arith.constant 0 : i32
    return %c0_i32, %c0_i32_0 : i32, i32
  }
  func.func @transform_23(%arg0: i32) -> (i32, i32) {
    %c0_i32 = arith.constant 0 : i32
    %c0_i32_0 = arith.constant 0 : i32
    %c0_i32_1 = arith.constant 0 : i32
    return %c0_i32, %c0_i32_0 : i32, i32
  }
  func.func @transform_24(%arg0: i32) -> (i32, i32) {
    %c0_i32 = arith.constant 0 : i32
    %c0_i32_0 = arith.constant 0 : i32
    %c0_i32_1 = arith.constant 0 : i32
    return %c0_i32, %c0_i32_0 : i32, i32
  }
  func.func @transform_25(%arg0: i32) -> (i32, i32) {
    %c0_i32 = arith.constant 0 : i32
    %c0_i32_0 = arith.constant 0 : i32
    %c0_i32_1 = arith.constant 0 : i32
    return %c0_i32, %c0_i32_0 : i32, i32
  }
  func.func @transform_26(%arg0: i32) -> (i32, i32) {
    %c0_i32 = arith.constant 0 : i32
    %c0_i32_0 = arith.constant 0 : i32
    %c0_i32_1 = arith.constant 0 : i32
    return %c0_i32, %c0_i32_0 : i32, i32
  }
  func.func @transform_27(%arg0: i32) -> (i32, i32) {
    %c0_i32 = arith.constant 0 : i32
    %c0_i32_0 = arith.constant 0 : i32
    %c0_i32_1 = arith.constant 0 : i32
    return %c0_i32, %c0_i32_0 : i32, i32
  }
  func.func @transform_28(%arg0: i32) -> (i32, i32) {
    %c0_i32 = arith.constant 0 : i32
    %c0_i32_0 = arith.constant 0 : i32
    %c0_i32_1 = arith.constant 0 : i32
    return %c0_i32, %c0_i32_0 : i32, i32
  }
  func.func @transform_29(%arg0: i32) -> (i32, i32) {
    %c0_i32 = arith.constant 0 : i32
    %c0_i32_0 = arith.constant 0 : i32
    %c0_i32_1 = arith.constant 0 : i32
    return %c0_i32, %c0_i32_0 : i32, i32
  }
  func.func @transform_30(%arg0: i32) -> (i32, i32) {
    %c0_i32 = arith.constant 0 : i32
    %c0_i32_0 = arith.constant 0 : i32
    %c0_i32_1 = arith.constant 0 : i32
    return %c0_i32, %c0_i32_0 : i32, i32
  }
  func.func @transform_31(%arg0: i32) -> (i32, i32) {
    %c0_i32 = arith.constant 0 : i32
    %c0_i32_0 = arith.constant 0 : i32
    %c0_i32_1 = arith.constant 0 : i32
    return %c0_i32, %c0_i32_0 : i32, i32
  }
}

</mosaic_0001>

<bundles_post_ra>
// kernel: tpu_custom_call.1
= control target key start
LH: loop header
LB: loop body
LE: loop exit
PB: predicated region body
PF: predicated region fallthrough
CT: control target
= control target key end

     0   :  { %s1027_s6 = smov 1   ;;  %s1028_s10 = smov 2   ;;  %s1577_s0 = inlined_call_operand.smem [shape: u32[32], index: -1, kind: input, shape index: {}] }
   0x1   :  { %s1069_s5 = sld [smem:[%s1577_s0]]   ;;  %s1029_s14 = smov 3  }
   0x2   :  { %s1074_s9 = sld [smem:[%s1577_s0 + %s1027_s6]]   ;;  %s1030_s18 = smov 4  }
   0x3   :  { %s1079_s13 = sld [smem:[%s1577_s0 + %s1028_s10]]   ;;  %s1031_s22 = smov 5  }
   0x4   :  { %s1084_s17 = sld [smem:[%s1577_s0 + %s1029_s14]]   ;;  %s1032_s26 = smov 6  }
   0x5   :  { %s1089_s21 = sld [smem:[%s1577_s0 + %s1030_s18]]   ;;  %s1033_s30 = smov 7  }
   0x6   :  { %s1094_s25 = sld [smem:[%s1577_s0 + %s1031_s22]]   ;;  %s1034_s4 = smov 8  }
   0x7   :  { %s1099_s29 = sld [smem:[%s1577_s0 + %s1032_s26]]   ;;  %s1035_s10 = smov 9  }
   0x8   :  { %s1104_s3 = sld [smem:[%s1577_s0 + %s1033_s30]]   ;;  %s1036_s15 = smov 10  }
   0x9   :  { %s1109_s8 = sld [smem:[%s1577_s0 + %s1034_s4]]   ;;  %s1037_s20 = smov 11  }
   0xa   :  { %s1114_s14 = sld [smem:[%s1577_s0 + %s1035_s10]]   ;;  %s1038_s26 = smov 12  }
   0xb   :  { %s1119_s19 = sld [smem:[%s1577_s0 + %s1036_s15]]   ;;  %s1039_s1 = smov 13  }
   0xc   :  { %s1124_s24 = sld [smem:[%s1577_s0 + %s1037_s20]]   ;;  %s1040_s7 = smov 14  }
   0xd   :  { %s1129_s30 = sld [smem:[%s1577_s0 + %s1038_s26]]   ;;  %s1041_s15 = smov 15  }
   0xe   :  { %s1134_s6 = sld [smem:[%s1577_s0 + %s1039_s1]]   ;;  %s1042_s22 = smov 16  }
   0xf   :  { %s1139_s12 = sld [smem:[%s1577_s0 + %s1040_s7]]   ;;  %s1043_s28 = smov 17  }
  0x10   :  { %s1144_s20 = sld [smem:[%s1577_s0 + %s1041_s15]]   ;;  %s1044_s7 = smov 18  }
  0x11   :  { %1578 = sst [smem:[#allocation5_spill]] %s1119_s19  ;;  %s1045_s15 = smov 19  }
  0x12   :  { %s1149_s27 = sld [smem:[%s1577_s0 + %s1042_s22]]   ;;  %s1046_s22 = smov 20  }
  0x13   :  { %s1154_s4 = sld [smem:[%s1577_s0 + %s1043_s28]]   ;;  %s1047_s28 = smov 21  }
  0x14   :  { %s1159_s19 = sld [smem:[%s1577_s0 + %s1044_s7]]   ;;  %s1048_s7 = smov 22  }
  0x15   :  { %s1056_s10 = smov 30   ;;  %s1057_s16 = smov 31  }
  0x16   :  { %1579 = sst [smem:[#allocation6_spill]] %s1144_s20 }
  0x17   :  { %s1164_s20 = sld [smem:[%s1577_s0 + %s1045_s15]]   ;;  %s1049_s15 = smov 23  }
  0x18   :  { %1580 = sst [smem:[#allocation7_spill]] %s1149_s27 }
  0x19   :  { %1581 = sst [smem:[#allocation8_spill]] %s1154_s4 }
  0x1a   :  { %1582 = sst [smem:[#allocation9_spill]] %s1159_s19 }
  0x1b   :  { %s1169_s27 = sld [smem:[%s1577_s0 + %s1046_s22]]   ;;  %s1050_s22 = smov 24  }
  0x1c   :  { %s1174_s4 = sld [smem:[%s1577_s0 + %s1047_s28]]   ;;  %s1051_s28 = smov 25  }
  0x1d   :  { %1583 = sst [smem:[#allocation10_spill]] %s1164_s20 }
  0x1e   :  { %s1179_s19 = sld [smem:[%s1577_s0 + %s1048_s7]]   ;;  %s1052_s7 = smov 26  }
  0x1f   :  { %s1184_s20 = sld [smem:[%s1577_s0 + %s1049_s15]]   ;;  %s1053_s15 = smov 27  }
  0x21   :  { %1584 = sst [smem:[#allocation11_spill]] %s1169_s27 }
  0x22   :  { %1585 = sst [smem:[#allocation12_spill]] %s1174_s4 }
  0x23   :  { %s1189_s27 = sld [smem:[%s1577_s0 + %s1050_s22]]   ;;  %s1054_s22 = smov 28  }
  0x24   :  { %1586 = sst [smem:[#allocation13_spill]] %s1179_s19 }
  0x25   :  { %1587 = sst [smem:[#allocation14_spill]] %s1184_s20 }
  0x26   :  { %s1194_s4 = sld [smem:[%s1577_s0 + %s1051_s28]]   ;;  %s1055_s28 = smov 29  }
  0x27   :  { %s1199_s19 = sld [smem:[%s1577_s0 + %s1052_s7]]  }
  0x28   :  { %s1204_s20 = sld [smem:[%s1577_s0 + %s1053_s15]]  }
  0x29   :  { %1588 = sst [smem:[#allocation15_spill]] %s1189_s27 }
  0x2a   :  { %s1209_s27 = sld [smem:[%s1577_s0 + %s1054_s22]]  }
  0x2c   :  { %1589 = sst [smem:[#allocation16_spill]] %s1194_s4 }
  0x2d   :  { %1590 = sst [smem:[#allocation17_spill]] %s1199_s19 }
  0x2e   :  { %1591 = sst [smem:[#allocation18_spill]] %s1204_s20 }
  0x2f   :  { %s848_s4 = sld [smem:[%s1577_s0 + %s1055_s28]]  }
  0x30   :  { %s1217_s19 = sld [smem:[%s1577_s0 + %s1056_s10]]  }
  0x31   :  { %s1222_s20 = sld [smem:[%s1577_s0 + %s1057_s16]]  }
  0x32   :  { %vm577_vm0 = vcmask 64512   ;;  %v1058_v6 = vmov 0  }
  0x33   :  { %952 = vset.pattern.permute.xlu1 %v1058_v6  ;;  %951 = vset.pattern.permute.xlu0 %v1058_v6 }
  0x35   :  { %v1224_v0 = vld [vmem:[%s848_s4 + $0x10] sm:$0xff]  ;;  %v1226_v1 = vld [vmem:[%s848_s4] sm:$0xff]  ;;  %v1228_v2 = vld [vmem:[%s848_s4 + $0x18] sm:$0xff] }
  0x36   :  { %v584_v3 = vsel %vm577_vm0, %v1224_v0, -inf  ;;  %v578_v4 = vsel %vm577_vm0, %v1226_v1, -inf  ;;  %v1234_v5 = vld [vmem:[%s848_s4 + $0x8] sm:$0xff]  ;;  %v587_v7 = vsel %vm577_vm0, %v1228_v2, -inf  ;;  %v1242_v10 = vld [vmem:[%s848_s4 + $0x20] sm:$0xff] }
  0x37   :  { %585 = vmax.xlane.f32.xlu1 %v584_v3  ;;  %579 = vmax.xlane.f32.xlu0 %v578_v4  ;;  %v581_v8 = vsel %vm577_vm0, %v1234_v5, -inf  ;;  %v1240_v9 = vld [vmem:[%s848_s4 + $0x28] sm:$0xff] }
  0x38   :  { %68 = vsyncpa [#allocation3], 0  ;;  %v593_v11 = vsel %vm577_vm0, %v1240_v9, -inf  ;;  %v590_v12 = vsel %vm577_vm0, %v1242_v10, -inf  ;;  %v1248_v13 = vld [vmem:[%s848_s4 + $0x38] sm:$0xff]  ;;  %v1250_v14 = vld [vmem:[%s848_s4 + $0x30] sm:$0xff]  ;;  %v674_v54 = vlaneseq }
  0x39   :  { %v599_v15 = vsel %vm577_vm0, %v1248_v13, -inf  ;;  %v596_v16 = vsel %vm577_vm0, %v1250_v14, -inf  ;;  %v525_v17 = vld [vmem:[%s1217_s19 + $0x8] sm:$0xff]  ;;  %v526_v18 = vld [vmem:[%s1217_s19 + $0x10] sm:$0xff]  ;;  %v524_v19 = vld [vmem:[%s1217_s19] sm:$0xff]  ;;  %s1594_s0 = sld [smem:[#allocation5_spill]] }
  0x3a   :  { %v527_v20 = vld [vmem:[%s1217_s19 + $0x18] sm:$0xff]  ;;  %v528_v21 = vld [vmem:[%s1217_s19 + $0x20] sm:$0xff]  ;;  %v529_v22 = vld [vmem:[%s1217_s19 + $0x28] sm:$0xff]  ;;  %v1308_v59 = vand.u32 127, %v674_v54  ;;  %vm226_vm15 = vcmask 254976  }
  0x3b   :  { %588 = vmax.xlane.f32.xlu1 %v587_v7  ;;  %582 = vmax.xlane.f32.xlu0 %v581_v8  ;;  %v530_v23 = vld [vmem:[%s1217_s19 + $0x30] sm:$0xff]  ;;  %v531_v24 = vld [vmem:[%s1217_s19 + $0x38] sm:$0xff]  ;;  %v1285_v39 = vld [vmem:[%s1069_s5] sm:$0xff]  ;;  %s1609_s19 = sld [smem:[#allocation13_spill]] }
  0x3c   :  { %v1292_v42 = vld [vmem:[%s1069_s5 + $0x8] sm:$0xff]  ;;  %v162_v45 = vsub.f32 1.0, %v1285_v39  ;;  %v133_v60 = vld [vmem:[%s1074_s9] sm:$0xff]  ;;  %s1597_s5 = sld [smem:[#allocation6_spill]] }
  0x3d   :  { %v163_v48 = vsub.f32 1.0, %v1292_v42  ;;  %v1314_v63 = vld [vmem:[%s1074_s9 + $0x8] sm:$0xff]  ;;  %vm140_vm1 = vcmp.eq.f32.partialorder %v133_v60, 1.0  ;;  %vm146_vm4 = vcmp.lt.f32.partialorder %v133_v60, 1.0  ;;  %v1361_v54 = vld [vmem:[%s1099_s29] sm:$0x3] }
  0x3e   :  { %vm141_vm2 = vcmp.eq.f32.partialorder %v1314_v63, 1.0  ;;  %vm147_vm7 = vcmp.lt.f32.partialorder %v1314_v63, 1.0  ;;  %s1598_s9 = sld [smem:[#allocation9_spill]] }
  0x3f   :  { %594 = vmax.xlane.f32.xlu1 %v593_v11  ;;  %591 = vmax.xlane.f32.xlu0 %v590_v12  ;;  %v1059_v11 = vmov 0.0   ;;  %s1603_s29 = sld [smem:[#allocation16_spill]] }
  0x40   :  { %v1320_v12 = vsel %vm140_vm1, 1.0, %v1059_v11 }
  0x43   :  { %600 = vmax.xlane.f32.xlu1 %v599_v15  ;;  %597 = vmax.xlane.f32.xlu0 %v596_v16  ;;  %v1323_v15 = vld [vmem:[%s1104_s3] sm:$0xff]  ;;  %s1604_s3 = sld [smem:[#allocation17_spill]] }
  0x54   :  { %680 = vperm.xlu1 %952, %v525_v17  }
  0x58   :  { %683 = vperm.xlu1 %952, %v526_v18   ;;  %v1327_v18 = vsel %vm141_vm2, 1.0, %v1059_v11 }
  0x59   :  { %677 = vperm.xlu0 %951, %v524_v19   ;;  %v152_v19 = vsub.f32 1.0, %v133_v60 }
  0x5c   :  { %686 = vperm.xlu1 %952, %v527_v20  }
  0x60   :  { %689 = vperm.xlu1 %952, %v528_v21  }
  0x64   :  { %692 = vperm.xlu1 %952, %v529_v22  }
  0x68   :  { %695 = vperm.xlu1 %952, %v530_v23   ;;  %v153_v23 = vsub.f32 1.0, %v1314_v63 }
  0x6c   :  { %698 = vperm.xlu1 %952, %v531_v24   ;;  %v137_v24 = vld [vmem:[%s1089_s21] sm:$0x3]  ;;  %s1601_s21 = sld [smem:[#allocation7_spill]] }
  0xc0   :  { %v1264_v25 = vpop.xlane.xlu1 %585  ;;  %v1266_v26 = vpop.xlane.xlu0 %579 }
  0xc1   :  { %v602_v27 = vsub.f32 %v1226_v1, %v1266_v26  ;;  %v604_v29 = vsub.f32 %v1224_v0, %v1264_v25 }
  0xc3   :  { %v610_v28 = vmul.f32 1.442695, %v602_v27  ;;  %v614_v36 = vmul.f32 1.442695, %v604_v29  ;;  %v138_v27 = vld [vmem:[%s1094_s25] sm:$0x3] }
  0xc4   :  { %v1272_v30 = vpop.xlane.xlu1 %588  ;;  %v1274_v31 = vpop.xlane.xlu0 %582  ;;  %s1602_s25 = sld [smem:[#allocation8_spill]] }
  0xc5   :  { %v605_v32 = vsub.f32 %v1228_v2, %v1272_v30  ;;  %v603_v33 = vsub.f32 %v1234_v5, %v1274_v31  ;;  %953 = vpow2.f32 %v610_v28 }
  0xc7   :  { %v616_v34 = vmul.f32 1.442695, %v605_v32  ;;  %v612_v35 = vmul.f32 1.442695, %v603_v33  ;;  %v164_v32 = vmul.f32 %v162_v45, %v162_v45  ;;  %v1339_v33 = vmul.f32 %v163_v48, %v163_v48 }
  0xc8   :  { %v1280_v37 = vpop.xlane.xlu1 %594  ;;  %v1282_v38 = vpop.xlane.xlu0 %591 }
  0xc9   :  { %955 = vpow2.f32 %v616_v34  ;;  %v607_v40 = vsub.f32 %v1240_v9, %v1280_v37  ;;  %v606_v41 = vsub.f32 %v1242_v10, %v1282_v38  ;;  %v1342_v34 = vsub.f32 1.0, %v1323_v15 }
  0xca   :  { %957 = vpow2.f32 %v612_v35 }
  0xcb   :  { %v620_v43 = vmul.f32 1.442695, %v607_v40  ;;  %v618_v44 = vmul.f32 1.442695, %v606_v41  ;;  %959 = vpow2.f32 %v614_v36  ;;  %v1349_v40 = vsel %vm146_vm4, 1.0, %v1059_v11 }
  0xcc   :  { %v1295_v46 = vpop.xlane.xlu1 %600  ;;  %v1297_v47 = vpop.xlane.xlu0 %597 }
  0xcd   :  { %961 = vpow2.f32 %v620_v43  ;;  %v609_v49 = vsub.f32 %v1248_v13, %v1295_v46  ;;  %v608_v50 = vsub.f32 %v1250_v14, %v1297_v47 }
  0xce   :  { %963 = vpow2.f32 %v618_v44 }
  0xcf   :  { %v624_v51 = vmul.f32 1.442695, %v609_v49  ;;  %v622_v52 = vmul.f32 1.442695, %v608_v50  ;;  %965 = vlog2.f32 %v162_v45  ;;  %v154_v45 = vmul.f32 %v152_v19, %v152_v19 }
  0xd0   :  { %v681_v53 = vpop.permute.xlu1 %680  ;;  %967 = vlog2.f32 %v163_v48  ;;  %v218_v48 = vsub.f32 %v137_v24, %v138_v27 }
  0xd1   :  { %969 = vpow2.f32 %v624_v51  ;;  %vm701_vm3 = vcmp.eq.s32.totalorder %v1308_v59, %v681_v53  ;;  %v155_v51 = vmul.f32 %v153_v23, %v153_v23  ;;  %v175_v53 = vmul.f32 %v1292_v42, %v1292_v42 }
  0xd2   :  { %971 = vpow2.f32 %v622_v52  ;;  %v954_v55 = vpop.eup %953  ;;  %v868_v29 = vsel %vm701_vm3, 1.0, %v1059_v11  ;;  %v174_v52 = vmul.f32 %v1285_v39, %v1285_v39 }
  0xd3   :  { %v626_v57 = vsel %vm577_vm0, %v954_v55, 0.0  ;;  %973 = vlog2.f32 %v1285_v39  ;;  %v725_v50 = vmul.f32 %v868_v29, %v1234_v5  ;;  %v135_v55 = vld [vmem:[%s1079_s13] sm:$0x3]  ;;  %s1599_s13 = sld [smem:[#allocation10_spill]] }
  0xd4   :  { %v1304_v56 = vpop.permute.xlu1 %683  ;;  %627 = vadd.xlane.f32.xlu1 %v626_v57  ;;  %975 = vlog2.f32 %v1292_v42  ;;  %v678_v7 = vpop.permute.xlu0 %677  ;;  %v136_v57 = vld [vmem:[%s1084_s17] sm:$0x3]  ;;  %s1600_s17 = sld [smem:[#allocation11_spill]] }
  0xd5   :  { %vm700_vm5 = vcmp.eq.s32.totalorder %v1308_v59, %v678_v7  ;;  %977 = vlog2.f32 %v1342_v34  ;;  %vm702_vm8 = vcmp.eq.s32.totalorder %v1308_v59, %v1304_v56  ;;  %v253_v7 = vsub.f32 %v135_v55, %v136_v57 }
  0xd6   :  { %v956_v58 = vpop.eup %955  ;;  %v867_v44 = vsel %vm700_vm5, 1.0, %v1059_v11  ;;  %v735_v56 = vsel %vm577_vm0, %v725_v50, 0.0  ;;  %979 = vlog2.f32 %v1323_v15 }
  0xd7   :  { %v958_v61 = vpop.eup %957  ;;  %v635_v62 = vsel %vm577_vm0, %v956_v58, 0.0  ;;  %v724_v42 = vmul.f32 %v867_v44, %v1226_v1  ;;  %v869_v1 = vsel %vm702_vm8, 1.0, %v1059_v11 }
  0xd8   :  { %v687_v3 = vpop.permute.xlu1 %686  ;;  %v629_v4 = vsel %vm577_vm0, %v958_v61, 0.0  ;;  %v960_v6 = vpop.eup %959  ;;  %636 = vadd.xlane.f32.xlu1 %v635_v62 }
  0xd9   :  { %630 = vadd.xlane.f32.xlu0 %v629_v4  ;;  %v632_v22 = vsel %vm577_vm0, %v960_v6, 0.0  ;;  %vm703_vm6 = vcmp.eq.s32.totalorder %v1308_v59, %v687_v3  ;;  %v854_v3 = vsel %vm147_vm7, 1.0, %v1059_v11  ;;  %v156_v4 = vmul.f32 %v154_v45, %v154_v45  ;;  %v278_v45 = vld [vmem:[%s1124_s24] sm:$0x3]  ;;  %s1612_s24 = sld [smem:[#allocation14_spill]] }
  0xda   :  { %v962_v8 = vpop.eup %961  ;;  %v870_v60 = vsel %vm703_vm6, 1.0, %v1059_v11  ;;  %v219_v6 = vmul.f32 %v218_v48, %v1361_v54  ;;  %v732_v24 = vsel %vm577_vm0, %v724_v42, 0.0  ;;  %v279_v48 = vld [vmem:[%s1129_s30] sm:$0x3]  ;;  %vm417_vm7 = vcmask 523264   ;;  %s1617_s30 = sld [smem:[#allocation15_spill]] }
  0xdb   :  { %v964_v16 = vpop.eup %963  ;;  %v641_v17 = vsel %vm577_vm0, %v962_v8, 0.0  ;;  %v1379_v8 = vld [vmem:[%s1139_s12] sm:$0xff]  ;;  %v335_v57 = vsub.f32 %v278_v45, %v279_v48 }
  0xdc   :  { %v966_v20 = vpop.eup %965  ;;  %v1329_v21 = vpop.permute.xlu1 %689  ;;  %642 = vadd.xlane.f32.xlu1 %v641_v17  ;;  %v638_v36 = vsel %vm577_vm0, %v964_v16, 0.0  ;;  %v727_v17 = vmul.f32 %v870_v60, %v1228_v2  ;;  %v1389_v2 = vsub.f32 1.0, %v1379_v8  ;;  %v222_v29 = vmul.f32 0.5, %v219_v6 }
  0xdd   :  { %v968_v28 = vpop.eup %967  ;;  %633 = vadd.xlane.f32.xlu0 %v632_v22  ;;  %v171_v5 = vmul.f32 0.6931472, %v966_v20  ;;  %v157_v20 = vmul.f32 %v155_v51, %v155_v51  ;;  %vm704_vm10 = vcmp.eq.s32.totalorder %v1308_v59, %v1329_v21  ;;  %v726_v21 = vmul.f32 %v869_v1, %v1224_v0 }
  0xde   :  { %v970_v35 = vpop.eup %969  ;;  %v173_v61 = vmul.f32 0.6931472, %v968_v28  ;;  %v220_v28 = vand.u32 2147483647, %v219_v6  ;;  %981 = vlog2.f32 %v1389_v2  ;;  %v206_v0 = vadd.f32 %v1327_v18, %v1320_v12 }
  0xdf   :  { %v972_v41 = vpop.eup %971  ;;  %v647_v43 = vsel %vm577_vm0, %v970_v35, 0.0  ;;  %v176_v63 = vmul.f32 %v174_v52, %v171_v5  ;;  %v254_v35 = vmul.f32 %v253_v7, %v1361_v54  ;;  %983 = vlog2.f32 %v1379_v8 }
  0xe0   :  { %v693_v49 = vpop.permute.xlu1 %692  ;;  %v974_v58 = vpop.eup %973  ;;  %648 = vadd.xlane.f32.xlu1 %v647_v43  ;;  %v644_v39 = vsel %vm577_vm0, %v972_v41, 0.0  ;;  %v177_v23 = vmul.f32 %v175_v53, %v173_v61  ;;  %v741_v41 = vsel %vm577_vm0, %v727_v17, 0.0  ;;  %vm1407_vm13 = vcmp.lt.f32.partialorder %v220_v28, 1.0  ;;  %v276_v17 = vld [vmem:[%s1114_s14] sm:$0x3]  ;;  %s1608_s14 = sld [smem:[#allocation12_spill]] }
  0xe1   :  { %639 = vadd.xlane.f32.xlu0 %v638_v36  ;;  %vm705_vm9 = vcmp.eq.s32.totalorder %v1308_v59, %v693_v49  ;;  %v976_v62 = vpop.eup %975  ;;  %v159_v19 = vmul.f32 0.6931472, %v974_v58  ;;  %v871_v49 = vsel %vm704_vm10, 1.0, %v1059_v11  ;;  %v178_v50 = vmul.f32 %v176_v63, %v156_v4 }
  0xe2   :  { %v872_v22 = vsel %vm705_vm9, 1.0, %v1059_v11  ;;  %v161_v27 = vmul.f32 0.6931472, %v976_v62  ;;  %v179_v51 = vmul.f32 %v177_v23, %v157_v20  ;;  %v257_v55 = vmul.f32 0.5, %v254_v35  ;;  %v1419_v62 = vld [vmem:[%s1134_s6] sm:$0x3]  ;;  %v978_v4 = vpop.eup %977 }
  0xe3   :  { %v729_v43 = vmul.f32 %v872_v22, %v1240_v9  ;;  %v166_v44 = vmul.f32 %v164_v32, %v159_v19  ;;  %v1404_v9 = vld [vmem:[%s1109_s8] sm:$0xff]  ;;  %v255_v32 = vand.u32 2147483647, %v254_v35  ;;  %v728_v60 = vmul.f32 %v871_v49, %v1242_v10  ;;  %s1607_s8 = sld [smem:[#allocation18_spill]] }
  0xe4   :  { %v696_v16 = vpop.permute.xlu1 %695  ;;  %736 = vadd.xlane.f32.xlu1 %v735_v56  ;;  %v167_v53 = vmul.f32 %v1339_v33, %v161_v27  ;;  %v180_v61 = vmul.f32 %v1349_v40, %v178_v50  ;;  %v287_v42 = vsub.f32 1.0, %v1404_v9  ;;  %v223_v56 = vmul.f32 %v222_v29, %v219_v6  ;;  %v277_v10 = vld [vmem:[%s1594_s0] sm:$0x3] }
  0xe5   :  { %645 = vadd.xlane.f32.xlu0 %v644_v39  ;;  %vm706_vm12 = vcmp.eq.s32.totalorder %v1308_v59, %v696_v16  ;;  %v747_v58 = vsel %vm577_vm0, %v729_v43, 0.0  ;;  %v181_v39 = vmul.f32 %v854_v3, %v179_v51  ;;  %v168_v7 = vmul.f32 %v1320_v12, %v166_v44  ;;  %v393_v51 = vld [vmem:[%s1598_s9] sm:$0x3] }
  0xe6   :  { %v873_v5 = vsel %vm706_vm12, 1.0, %v1059_v11  ;;  %v169_v16 = vmul.f32 %v1327_v18, %v167_v53  ;;  %vm1425_vm14 = vcmp.lt.f32.partialorder %v255_v32, 1.0  ;;  %v258_v20 = vmul.f32 %v257_v55, %v254_v35  ;;  %v980_v35 = vpop.eup %979  ;;  %v513_v19 = vld [vmem:[%s1604_s3] sm:$0x3] }
  0xe7   :  { %v856_v40 = vadd.f32 -0.5, %v255_v32  ;;  %v298_v3 = vmul.f32 %v1323_v15, %v1323_v15  ;;  %v744_v22 = vsel %vm577_vm0, %v728_v60, 0.0  ;;  %v730_v63 = vmul.f32 %v873_v5, %v1250_v14  ;;  %v1440_v14 = vld [vmem:[%s1597_s5] sm:$0xff] }
  0xe8   :  { %v699_v36 = vpop.permute.xlu1 %698  ;;  %742 = vadd.xlane.f32.xlu1 %v741_v41  ;;  %v336_v6 = vmul.f32 %v335_v57, %v1419_v62  ;;  %v193_v23 = vadd.f32 %v181_v39, %v180_v61  ;;  %v297_v27 = vmul.f32 0.6931472, %v978_v4  ;;  %v182_v29 = vadd.f32 %v169_v16, %v168_v7  ;;  %v1466_v4 = vld [vmem:[%s1600_s17] sm:$0x3] }
  0xe9   :  { %vm707_vm11 = vcmp.eq.s32.totalorder %v1308_v59, %v699_v36  ;;  %733 = vadd.xlane.f32.xlu0 %v732_v24  ;;  %v738_v59 = vsel %vm577_vm0, %v726_v21, 0.0  ;;  %v288_v24 = vmul.f32 %v287_v42, %v287_v42  ;;  %vm284_vm1 = vcmp.lt.f32.partialorder %v1404_v9, 1.0  ;;  %v391_v7 = vld [vmem:[%s1601_s21] sm:$0x3]  ;;  %s1060_s21 = smov [#allocation2]  }
  0xea   :  { %v874_v52 = vsel %vm707_vm11, 1.0, %v1059_v11  ;;  %v750_v36 = vsel %vm577_vm0, %v730_v63, 0.0  ;;  %v260_v41 = vsel %vm1425_vm14, %v258_v20, %v856_v40  ;;  %v337_v43 = vand.u32 2147483647, %v336_v6  ;;  %v392_v16 = vld [vmem:[%s1602_s25] sm:$0x3] }
  0xeb   :  { %v731_v33 = vmul.f32 %v874_v52, %v1248_v13  ;;  %v855_v13 = vadd.f32 -0.5, %v220_v28  ;;  %v368_v28 = vsub.f32 %v276_v17, %v277_v10  ;;  %v339_v21 = vmul.f32 0.5, %v336_v6  ;;  %v394_v52 = vld [vmem:[%s1599_s13] sm:$0x3]  ;;  %v982_v53 = vpop.eup %981  ;;  %s812_s25 = sshll.u32 %s1060_s21, 4  ;;  %s813_s25 = int_to_ptr.vmem [resolvable:$true] %s812_s25 }
  0xec   :  { %748 = vadd.xlane.f32.xlu1 %v747_v58  ;;  %v289_v44 = vmul.f32 %v288_v24, %v288_v24  ;;  %v299_v45 = vmul.f32 %v298_v3, %v297_v27  ;;  %v402_v50 = vsub.f32 1.0, %v1440_v14  ;;  %v293_v32 = vmul.f32 %v1342_v34, %v1342_v34  ;;  %v512_v10 = vld [vmem:[%s1603_s29] sm:$0x3]  ;;  %s1005_s29 = scalar_lea.vmem %s813_s25, 128  ;;  %p1010_p1 = scmp.lt.s32.totalorder %s813_s25, %s813_s25 }
  0xed   :  { %739 = vadd.xlane.f32.xlu0 %v738_v59  ;;  %v753_v1 = vsel %vm577_vm0, %v731_v33, 0.0  ;;  %v225_v15 = vsel %vm1407_vm13, %v223_v56, %v855_v13  ;;  %v369_v48 = vmul.f32 %v368_v28, %v1419_v62  ;;  %vm281_vm0 = vcmp.eq.f32.partialorder %v1404_v9, 1.0  ;;  %v514_v27 = vld [vmem:[%s1607_s8] sm:$0x3]  ;;  %p1006_p0 = scmp.ne.s32.totalorder %s813_s25, %s1005_s29  ;;  %p1011_p2 = scmp.lt.s32.totalorder %s1005_s29, %s1005_s29 }
  0xee   :  { %v227_v49 = vsel %vm226_vm15, %v225_v15, 0.0  ;;  %v858_v55 = vsel %vm284_vm1, 1.0, %v1059_v11  ;;  %v261_v57 = vsel %vm226_vm15, %v260_v41, 0.0  ;;  %v291_v58 = vmul.f32 0.6931472, %v980_v35 }
  0xef   :  { %v340_v59 = vmul.f32 %v339_v21, %v336_v6  ;;  %v859_v33 = vadd.f32 -0.5, %v337_v43  ;;  %v300_v12 = vmul.f32 %v299_v45, %v289_v44  ;;  %vm1459_vm2 = vcmp.lt.f32.partialorder %v337_v43, 1.0  ;;  %v984_v6 = vpop.eup %983  ;;  %v508_v28 = vld [vmem:[%s1608_s14] sm:$0x3]  ;;  %p1012_p3 = por %p1011_p2, %p1010_p1 }
  0xf0   :  { %754 = vadd.xlane.f32.xlu1 %v753_v1  ;;  %v372_v34 = vmul.f32 0.5, %v369_v48  ;;  %v454_v60 = vsub.f32 %v393_v51, %v394_v52  ;;  %v370_v5 = vand.u32 2147483647, %v369_v48  ;;  %v403_v61 = vmul.f32 %v402_v50, %v402_v50  ;;  %v510_v50 = vld [vmem:[%s1612_s24] sm:$0x3] }
  0xf1   :  { %745 = vadd.xlane.f32.xlu0 %v744_v22  ;;  %v412_v39 = vmul.f32 0.6931472, %v982_v53  ;;  %v413_v42 = vmul.f32 %v1379_v8, %v1379_v8  ;;  %v239_v56 = vsel %vm226_vm15, %v1361_v54, 0.0  ;;  %v294_v13 = vmul.f32 %v293_v32, %v291_v58  ;;  %p1013_p4 = pnand %p1012_p3, %p1006_p0 }
  0xf2   :  { %v342_v17 = vsel %vm1459_vm2, %v340_v59, %v859_v33  ;;  %v857_v8 = vsel %vm281_vm0, 1.0, %v1059_v11  ;;  %v301_v20 = vmul.f32 %v858_v55, %v300_v12  ;;  %v373_v40 = vmul.f32 %v372_v34, %v369_v48 }
  0xf3   :  { %v455_v3 = vmul.f32 %v454_v60, %v1466_v4  ;;  %v860_v54 = vadd.f32 -0.5, %v370_v5  ;;  %v404_v1 = vmul.f32 %v403_v61, %v403_v61  ;;  %v414_v22 = vmul.f32 %v413_v42, %v412_v39 }
  0xf4   :  { %194 = vadd.xlane.f32.xlu1 %v193_v23  ;;  %v487_v63 = vsub.f32 %v391_v7, %v392_v16  ;;  %vm1480_vm3 = vcmp.lt.f32.partialorder %v370_v5, 1.0  ;;  %vm399_vm4 = vcmp.lt.f32.partialorder %v1440_v14, 1.0  ;;  %v554_v24 = vsub.f32 %v512_v10, %v513_v19  ;;  %v515_v10 = vld [vmem:[%s1209_s27] sm:$0x3] }
  0xf5   :  { %751 = vadd.xlane.f32.xlu0 %v750_v36  ;;  %v408_v9 = vmul.f32 %v1389_v2, %v1389_v2  ;;  %v295_v15 = vmul.f32 %v857_v8, %v294_v13  ;;  %v343_v35 = vsel %vm226_vm15, %v342_v17, 0.0  ;;  %v456_v36 = vand.u32 2147483647, %v455_v3 }
  0xf6   :  { %v458_v41 = vmul.f32 0.5, %v455_v3  ;;  %v375_v43 = vsel %vm1480_vm3, %v373_v40, %v860_v54  ;;  %v406_v21 = vmul.f32 0.6931472, %v984_v6  ;;  %v415_v44 = vmul.f32 %v414_v22, %v404_v1  ;;  %v511_v1 = vld [vmem:[%s1617_s30] sm:$0x3] }
  0xf7   :  { %v488_v45 = vmul.f32 %v487_v63, %v1466_v4  ;;  %v862_v2 = vsel %vm399_vm4, 1.0, %v1059_v11  ;;  %v555_v48 = vmul.f32 %v554_v24, %v514_v27  ;;  %vm396_vm5 = vcmp.eq.f32.partialorder %v1440_v14, 1.0 }
  0xf8   :  { %228 = vadd.xlane.f32.xlu1 %v227_v49  ;;  %v376_v51 = vsel %vm226_vm15, %v375_v43, 0.0  ;;  %vm1500_vm6 = vcmp.lt.f32.partialorder %v456_v36, 1.0  ;;  %v459_v53 = vmul.f32 %v458_v41, %v455_v3  ;;  %v409_v32 = vmul.f32 %v408_v9, %v406_v21 }
  0xf9   :  { %183 = vadd.xlane.f32.xlu0 %v182_v29  ;;  %v509_v29 = vld [vmem:[%s1609_s19] sm:$0x3]  ;;  %v416_v55 = vmul.f32 %v862_v2, %v415_v44  ;;  %v491_v58 = vmul.f32 0.5, %v488_v45  ;;  %v861_v59 = vsel %vm396_vm5, 1.0, %v1059_v11  ;;  %v556_v33 = vand.u32 2147483647, %v555_v48 }
  0xfa   :  { %v532_v49 = vsub.f32 %v508_v28, %v509_v29  ;;  %v558_v12 = vmul.f32 0.5, %v555_v48  ;;  %v355_v18 = vsel %vm226_vm15, %v1419_v62, 0.0  ;;  %v410_v60 = vmul.f32 %v861_v59, %v409_v32 }
  0xfb   :  { %v429_v5 = vsel %vm417_vm7, %v416_v55, 0.0  ;;  %v492_v61 = vmul.f32 %v491_v58, %v488_v45  ;;  %v866_v11 = vadd.f32 -0.5, %v556_v33  ;;  %vm557_vm9 = vcmp.lt.f32.partialorder %v556_v33, 1.0 }
  0xfc   :  { %262 = vadd.xlane.f32.xlu1 %v261_v57  ;;  %v489_v57 = vand.u32 2147483647, %v488_v45  ;;  %v533_v14 = vmul.f32 %v532_v49, %v510_v50  ;;  %v559_v42 = vmul.f32 %v558_v12, %v555_v48  ;;  %v418_v62 = vsel %vm417_vm7, %v410_v60, 0.0 }
  0xfd   :  { %207 = vadd.xlane.f32.xlu0 %v206_v0  ;;  %v863_v0 = vadd.f32 -0.5, %v456_v36  ;;  %v442_v40 = vsel %vm417_vm7, %v861_v59, 0.0  ;;  %vm541_vm11 = vcmask 517120   ;;  %v474_v63 = vsel %vm226_vm15, %v1466_v4, 0.0 }
  0xfe   :  { %v864_v39 = vadd.f32 -0.5, %v489_v57  ;;  %v534_v7 = vand.u32 2147483647, %v533_v14  ;;  %v536_v16 = vmul.f32 0.5, %v533_v14  ;;  %vm1510_vm8 = vcmp.lt.f32.partialorder %v489_v57, 1.0 }
  0xff   :  { %v461_v34 = vsel %vm1500_vm6, %v459_v53, %v863_v0  ;;  %v561_v19 = vsel %vm557_vm9, %v559_v42, %v866_v11  ;;  %vm764_vm12 = vcmask 7168  }
 0x100   :  { %312 = vadd.xlane.f32.xlu1 %v301_v20  ;;  %v462_v13 = vsel %vm226_vm15, %v461_v34, 0.0  ;;  %v494_v17 = vsel %vm1510_vm8, %v492_v61, %v864_v39  ;;  %v865_v20 = vadd.f32 -0.5, %v534_v7  ;;  %vm535_vm10 = vcmp.lt.f32.partialorder %v534_v7, 1.0 }
 0x101   :  { %240 = vadd.xlane.f32.xlu0 %v239_v56  ;;  %v495_v3 = vsel %vm226_vm15, %v494_v17, 0.0  ;;  %v562_v54 = vmul.f32 %v561_v19, %v515_v10 }
 0x103   :  { %v563_v6 = vsel %vm541_vm11, %v562_v54, 0.0 }
 0x104   :  { %344 = vadd.xlane.f32.xlu1 %v343_v35 }
 0x105   :  { %302 = vadd.xlane.f32.xlu0 %v295_v15 }
 0x108   :  { %377 = vadd.xlane.f32.xlu1 %v376_v51 }
 0x109   :  { %324 = vadd.xlane.f32.xlu0 %v857_v8  ;;  %v537_v8 = vmul.f32 %v536_v16, %v533_v14 }
 0x10b   :  { %v539_v22 = vsel %vm535_vm10, %v537_v8, %v865_v20 }
 0x10c   :  { %430 = vadd.xlane.f32.xlu1 %v429_v5  ;;  %v540_v23 = vmul.f32 %v539_v22, %v511_v1 }
 0x10d   :  { %356 = vadd.xlane.f32.xlu0 %v355_v18 }
 0x10e   :  { %v542_v24 = vsel %vm541_vm11, %v540_v23, 0.0 }
 0x110   :  { %463 = vadd.xlane.f32.xlu1 %v462_v13 }
 0x111   :  { %419 = vadd.xlane.f32.xlu0 %v418_v62 }
 0x114   :  { %496 = vadd.xlane.f32.xlu1 %v495_v3 }
 0x115   :  { %443 = vadd.xlane.f32.xlu0 %v442_v40 }
 0x118   :  { %564 = vadd.xlane.f32.xlu1 %v563_v6 }
 0x119   :  { %475 = vadd.xlane.f32.xlu0 %v474_v63 }
 0x11d   :  { %543 = vadd.xlane.f32.xlu0 %v542_v24 }
 0x15d   :  { %v628_v9 = vpop.xlane.xlu1 %627 }
 0x15e   :  { %985 = vlog2.f32 %v628_v9 }
 0x161   :  { %v637_v27 = vpop.xlane.xlu1 %636 }
 0x162   :  { %v631_v28 = vpop.xlane.xlu0 %630  ;;  %987 = vlog2.f32 %v637_v27 }
 0x163   :  { %989 = vlog2.f32 %v631_v28 }
 0x165   :  { %v643_v29 = vpop.xlane.xlu1 %642 }
 0x166   :  { %v634_v15 = vpop.xlane.xlu0 %633  ;;  %991 = vlog2.f32 %v643_v29 }
 0x167   :  { %993 = vlog2.f32 %v634_v15 }
 0x169   :  { %v649_v35 = vpop.xlane.xlu1 %648 }
 0x16a   :  { %v640_v36 = vpop.xlane.xlu0 %639  ;;  %995 = vlog2.f32 %v649_v35 }
 0x16b   :  { %v986_v4 = vpop.eup %985  ;;  %997 = vlog2.f32 %v640_v36 }
 0x16c   :  { %v651_v21 = vmul.f32 0.6931472, %v986_v4 }
 0x16d   :  { %v737_v43 = vpop.xlane.xlu1 %736 }
 0x16e   :  { %v646_v41 = vpop.xlane.xlu0 %645  ;;  %v666_v51 = vadd.f32 %v651_v21, %v1266_v26 }
 0x16f   :  { %999 = vlog2.f32 %v646_v41  ;;  %v988_v44 = vpop.eup %987 }
 0x170   :  { %v990_v45 = vpop.eup %989  ;;  %v657_v2 = vmul.f32 0.6931472, %v988_v44 }
 0x171   :  { %v653_v48 = vmul.f32 0.6931472, %v990_v45  ;;  %v743_v49 = vpop.xlane.xlu1 %742 }
 0x172   :  { %v734_v50 = vpop.xlane.xlu0 %733  ;;  %v669_v32 = vadd.f32 %v657_v2, %v1272_v30 }
 0x173   :  { %v992_v52 = vpop.eup %991  ;;  %v667_v53 = vadd.f32 %v653_v48, %v1274_v31  ;;  %v756_v55 = vsub.f32 %v666_v51, %v734_v50 }
 0x174   :  { %v994_v0 = vpop.eup %993  ;;  %v661_v57 = vmul.f32 0.6931472, %v992_v52  ;;  %v759_v26 = vsub.f32 %v669_v32, %v743_v49 }
 0x175   :  { %v655_v58 = vmul.f32 0.6931472, %v994_v0  ;;  %v757_v59 = vsub.f32 %v667_v53, %v737_v43  ;;  %v749_v33 = vpop.xlane.xlu1 %748  ;;  %v765_v5 = vsel %vm764_vm12, %v756_v55, 0.0 }
 0x176   :  { %v740_v12 = vpop.xlane.xlu0 %739  ;;  %v671_v30 = vadd.f32 %v661_v57, %v1280_v37 }
 0x177   :  { %v996_v14 = vpop.eup %995  ;;  %v766_v18 = vsel %vm764_vm12, %v757_v59, 0.0  ;;  %v668_v34 = vadd.f32 %v655_v58, %v1264_v25  ;;  %v770_v25 = vsel %vm764_vm12, %v759_v26, 0.0 }
 0x178   :  { %v998_v60 = vpop.eup %997  ;;  %v665_v31 = vmul.f32 0.6931472, %v996_v14  ;;  %v767_v7 = vadd.f32 %v766_v18, %v765_v5  ;;  %v761_v10 = vsub.f32 %v671_v30, %v749_v33 }
 0x179   :  { %v659_v61 = vmul.f32 0.6931472, %v998_v60  ;;  %v758_v39 = vsub.f32 %v668_v34, %v740_v12  ;;  %v755_v42 = vpop.xlane.xlu1 %754 }
 0x17a   :  { %v746_v11 = vpop.xlane.xlu0 %745  ;;  %v673_v19 = vadd.f32 %v665_v31, %v1295_v46 }
 0x17b   :  { %v768_v56 = vsel %vm764_vm12, %v758_v39, 0.0  ;;  %v670_v62 = vadd.f32 %v659_v61, %v1282_v38  ;;  %v774_v38 = vsel %vm764_vm12, %v761_v10, 0.0 }
 0x17c   :  { %v1000_v16 = vpop.eup %999  ;;  %v769_v17 = vadd.f32 %v768_v56, %v767_v7  ;;  %v763_v23 = vsub.f32 %v673_v19, %v755_v42 }
 0x17d   :  { %v663_v13 = vmul.f32 0.6931472, %v1000_v16  ;;  %v760_v8 = vsub.f32 %v670_v62, %v746_v11  ;;  %v195_v40 = vpop.xlane.xlu1 %194 }
 0x17e   :  { %v752_v20 = vpop.xlane.xlu0 %751  ;;  %v771_v37 = vadd.f32 %v770_v25, %v769_v17  ;;  %v196_v54 = vrot.slane %v195_v40, 4  ;;  %v778_v4 = vsel %vm764_vm12, %v763_v23, 0.0 }
 0x17f   :  { %v672_v3 = vadd.f32 %v663_v13, %v1297_v47  ;;  %v772_v1 = vsel %vm764_vm12, %v760_v8, 0.0 }
 0x180   :  { %v773_v22 = vadd.f32 %v772_v1, %v771_v37  ;;  %v197_v6 = vadd.f32 %v196_v54, %v195_v40 }
 0x181   :  { %v762_v63 = vsub.f32 %v672_v3, %v752_v20  ;;  %v229_v9 = vpop.xlane.xlu1 %228 }
 0x182   :  { %v184_v24 = vpop.xlane.xlu0 %183  ;;  %v775_v46 = vadd.f32 %v774_v38, %v773_v22  ;;  %v198_v29 = vrot.slane %v197_v6, 2  ;;  %v230_v15 = vrot.slane %v229_v9, 4 }
 0x183   :  { %v776_v27 = vsel %vm764_vm12, %v762_v63, 0.0  ;;  %v185_v28 = vrot.slane %v184_v24, 4 }
 0x184   :  { %v777_v35 = vadd.f32 %v776_v27, %v775_v46  ;;  %v199_v47 = vadd.f32 %v198_v29, %v197_v6  ;;  %v231_v43 = vadd.f32 %v230_v15, %v229_v9 }
 0x185   :  { %v186_v36 = vadd.f32 %v185_v28, %v184_v24  ;;  %v263_v21 = vpop.xlane.xlu1 %262 }
 0x186   :  { %v208_v41 = vpop.xlane.xlu0 %207  ;;  %v779_v44 = vadd.f32 %v778_v4, %v777_v35  ;;  %v264_v48 = vrot.slane %v263_v21, 4  ;;  %v232_v49 = vrot.slane %v231_v43, 2  ;;  %v200_v50 = vrot.slane %v199_v47, 1 }
 0x187   :  { %v187_v45 = vrot.slane %v186_v36, 2  ;;  %v209_v2 = vrot.slane %v208_v41, 4 }
 0x188   :  { %780 = vadd.xlane.f32.xlu0 %v779_v44  ;;  %v265_v52 = vadd.f32 %v264_v48, %v263_v21  ;;  %v233_v55 = vadd.f32 %v232_v49, %v231_v43  ;;  %v201_v14 = vadd.f32 %v200_v50, %v199_v47 }
 0x189   :  { %v210_v51 = vadd.f32 %v209_v2, %v208_v41  ;;  %v188_v53 = vadd.f32 %v187_v45, %v186_v36  ;;  %v313_v32 = vpop.xlane.xlu1 %312 }
 0x18a   :  { %v241_v0 = vpop.xlane.xlu0 %240  ;;  %v266_v59 = vrot.slane %v265_v52, 2  ;;  %v314_v33 = vrot.slane %v313_v32, 4  ;;  %v234_v18 = vrot.slane %v233_v55, 1 }
 0x18b   :  { %v211_v57 = vrot.slane %v210_v51, 2  ;;  %v242_v58 = vrot.slane %v241_v0, 4  ;;  %v189_v12 = vrot.slane %v188_v53, 1 }
 0x18c   :  { %v315_v60 = vadd.f32 %v314_v33, %v313_v32  ;;  %v267_v5 = vadd.f32 %v266_v59, %v265_v52  ;;  %v235_v56 = vadd.f32 %v234_v18, %v233_v55 }
 0x18d   :  { %v243_v34 = vadd.f32 %v242_v58, %v241_v0  ;;  %v212_v26 = vadd.f32 %v211_v57, %v210_v51  ;;  %v345_v61 = vpop.xlane.xlu1 %344  ;;  %v190_v30 = vadd.f32 %v189_v12, %v188_v53 }
 0x18e   :  { %v303_v31 = vpop.xlane.xlu0 %302  ;;  %v316_v11 = vrot.slane %v315_v60, 2  ;;  %v346_v7 = vrot.slane %v345_v61, 4  ;;  %v268_v62 = vrot.slane %v267_v5, 1 }
 0x18f   :  { %v244_v39 = vrot.slane %v243_v34, 2  ;;  %v304_v42 = vrot.slane %v303_v31, 4  ;;  %875 = vpush %v190_v30  ;;  %v213_v16 = vrot.slane %v212_v26, 1 }
 0x190   :  { %v347_v17 = vadd.f32 %v346_v7, %v345_v61  ;;  %877 = vpush %v201_v14  ;;  %v317_v10 = vadd.f32 %v316_v11, %v315_v60  ;;  %v269_v22 = vadd.f32 %v268_v62, %v267_v5 }
 0x191   :  { %v305_v13 = vadd.f32 %v304_v42, %v303_v31  ;;  %v245_v25 = vadd.f32 %v244_v39, %v243_v34  ;;  %v378_v8 = vpop.xlane.xlu1 %377  ;;  %v214_v20 = vadd.f32 %v213_v16, %v212_v26 }
 0x192   :  { %v325_v19 = vpop.xlane.xlu0 %324  ;;  %v348_v3 = vrot.slane %v347_v17, 2  ;;  %v379_v54 = vrot.slane %v378_v8, 4  ;;  %v318_v63 = vrot.slane %v317_v10, 1 }
 0x193   :  { %v306_v40 = vrot.slane %v305_v13, 2  ;;  %v326_v37 = vrot.slane %v325_v19, 4  ;;  %879 = vpush %v214_v20  ;;  %v246_v1 = vrot.slane %v245_v25, 1 }
 0x194   :  { %v380_v38 = vadd.f32 %v379_v54, %v378_v8  ;;  %881 = vpush %v235_v56  ;;  %v349_v24 = vadd.f32 %v348_v3, %v347_v17  ;;  %v319_v47 = vadd.f32 %v318_v63, %v317_v10 }
 0x195   :  { %v327_v6 = vadd.f32 %v326_v37, %v325_v19  ;;  %v307_v23 = vadd.f32 %v306_v40, %v305_v13  ;;  %v431_v27 = vpop.xlane.xlu1 %430  ;;  %v247_v46 = vadd.f32 %v246_v1, %v245_v25 }
 0x196   :  { %v357_v9 = vpop.xlane.xlu0 %356  ;;  %v381_v15 = vrot.slane %v380_v38, 2  ;;  %v432_v35 = vrot.slane %v431_v27, 4  ;;  %v350_v4 = vrot.slane %v349_v24, 1 }
 0x197   :  { %v328_v28 = vrot.slane %v327_v6, 2  ;;  %v358_v29 = vrot.slane %v357_v9, 4  ;;  %883 = vpush %v247_v46  ;;  %v308_v36 = vrot.slane %v307_v23, 1 }
 0x198   :  { %v433_v43 = vadd.f32 %v432_v35, %v431_v27  ;;  %885 = vpush %v269_v22  ;;  %v382_v44 = vadd.f32 %v381_v15, %v380_v38  ;;  %v351_v0 = vadd.f32 %v350_v4, %v349_v24 }
 0x199   :  { %v359_v41 = vadd.f32 %v358_v29, %v357_v9  ;;  %v329_v21 = vadd.f32 %v328_v28, %v327_v6  ;;  %v464_v2 = vpop.xlane.xlu1 %463  ;;  %v309_v48 = vadd.f32 %v308_v36, %v307_v23 }
 0x19a   :  { %v420_v45 = vpop.xlane.xlu0 %419  ;;  %v434_v51 = vrot.slane %v433_v43, 2  ;;  %v465_v52 = vrot.slane %v464_v2, 4  ;;  %v383_v32 = vrot.slane %v382_v44, 1 }
 0x19b   :  { %v360_v49 = vrot.slane %v359_v41, 2  ;;  %v421_v50 = vrot.slane %v420_v45, 4  ;;  %887 = vpush %v309_v48  ;;  %v330_v53 = vrot.slane %v329_v21, 1 }
 0x19c   :  { %v466_v57 = vadd.f32 %v465_v52, %v464_v2  ;;  %889 = vpush %v319_v47  ;;  %v435_v59 = vadd.f32 %v434_v51, %v433_v43  ;;  %v384_v5 = vadd.f32 %v383_v32, %v382_v44 }
 0x19d   :  { %v422_v55 = vadd.f32 %v421_v50, %v420_v45  ;;  %v361_v58 = vadd.f32 %v360_v49, %v359_v41  ;;  %v331_v12 = vadd.f32 %v330_v53, %v329_v21  ;;  %v497_v14 = vpop.xlane.xlu1 %496 }
 0x19e   :  { %v444_v33 = vpop.xlane.xlu0 %443  ;;  %v467_v60 = vrot.slane %v466_v57, 2  ;;  %v436_v31 = vrot.slane %v435_v59, 1  ;;  %v498_v61 = vrot.slane %v497_v14, 4 }
 0x19f   :  { %v423_v18 = vrot.slane %v422_v55, 2  ;;  %v445_v34 = vrot.slane %v444_v33, 4  ;;  %v362_v26 = vrot.slane %v361_v58, 1  ;;  %891 = vpush %v331_v12 }
 0x1a0   :  { %893 = vpush %v351_v0  ;;  %v468_v11 = vadd.f32 %v467_v60, %v466_v57  ;;  %v499_v16 = vadd.f32 %v498_v61, %v497_v14  ;;  %v437_v25 = vadd.f32 %v436_v31, %v435_v59 }
 0x1a1   :  { %v446_v30 = vadd.f32 %v445_v34, %v444_v33  ;;  %v363_v39 = vadd.f32 %v362_v26, %v361_v58  ;;  %v424_v42 = vadd.f32 %v423_v18, %v422_v55  ;;  %v565_v56 = vpop.xlane.xlu1 %564 }
 0x1a2   :  { %v476_v7 = vpop.xlane.xlu0 %475  ;;  %v469_v10 = vrot.slane %v468_v11, 1  ;;  %v500_v19 = vrot.slane %v499_v16, 2  ;;  %v566_v8 = vrot.slane %v565_v56, 4 }
 0x1a3   :  { %v447_v62 = vrot.slane %v446_v30, 2  ;;  %v477_v13 = vrot.slane %v476_v7, 4  ;;  %895 = vpush %v363_v39  ;;  %v425_v17 = vrot.slane %v424_v42, 1 }
 0x1a4   :  { %897 = vpush %v384_v5  ;;  %v567_v3 = vadd.f32 %v566_v8, %v565_v56  ;;  %v501_v1 = vadd.f32 %v500_v19, %v499_v16  ;;  %v470_v38 = vadd.f32 %v469_v10, %v468_v11 }
 0x1a5   :  { %v478_v20 = vadd.f32 %v477_v13, %v476_v7  ;;  %v426_v40 = vadd.f32 %v425_v17, %v424_v42  ;;  %v448_v37 = vadd.f32 %v447_v62, %v446_v30 }
 0x1a6   :  { %v544_v54 = vpop.xlane.xlu0 %543  ;;  %v568_v23 = vrot.slane %v567_v3, 2  ;;  %v502_v24 = vrot.slane %v501_v1, 1 }
 0x1a7   :  { %v479_v22 = vrot.slane %v478_v20, 2  ;;  %899 = vpush %v426_v40  ;;  %v449_v63 = vrot.slane %v448_v37, 1  ;;  %v545_v6 = vrot.slane %v544_v54, 4 }
 0x1a8   :  { %901 = vpush %v437_v25  ;;  %v569_v28 = vadd.f32 %v568_v23, %v567_v3  ;;  %v503_v35 = vadd.f32 %v502_v24, %v501_v1 }
 0x1a9   :  { %v450_v9 = vadd.f32 %v449_v63, %v448_v37  ;;  %v480_v27 = vadd.f32 %v479_v22, %v478_v20  ;;  %v546_v46 = vadd.f32 %v545_v6, %v544_v54 }
 0x1aa   :  { %v570_v36 = vrot.slane %v569_v28, 1 }
 0x1ab   :  { %903 = vpush %v450_v9  ;;  %v481_v29 = vrot.slane %v480_v27, 1  ;;  %v547_v15 = vrot.slane %v546_v46, 2 }
 0x1ac   :  { %905 = vpush %v470_v38  ;;  %v571_v43 = vadd.f32 %v570_v36, %v569_v28 }
 0x1ad   :  { %v482_v47 = vadd.f32 %v481_v29, %v480_v27  ;;  %v548_v4 = vadd.f32 %v547_v15, %v546_v46 }
 0x1af   :  { %907 = vpush %v482_v47  ;;  %v549_v41 = vrot.slane %v548_v4, 1 }
 0x1b0   :  { %909 = vpush %v503_v35 }
 0x1b1   :  { %v550_v21 = vadd.f32 %v549_v41, %v548_v4 }
 0x1b3   :  { %911 = vpush %v550_v21 }
 0x1b4   :  { %913 = vpush %v571_v43 }
 0x1c0   :  { %s1540_s6 = spop %875 }
 0x1c1   :  { %s1542_s12 = spop %877  ;;  %v192_v11 = vstv %s1540_s6 }
 0x1c2   :  { %v203_v7 = vstv %s1542_s12 }
 0x1c3   :  { %v204_v56 = vadd.f32 %v203_v7, %v192_v11 }
 0x1c4   :  { %s1544_s27 = spop %879 }
 0x1c5   :  { %s1546_s4 = spop %881  ;;  %v216_v59 = vstv %s1544_s27  ;;  %v205_v10 = vsub.f32 0.0, %v204_v56 }
 0x1c6   :  { %v237_v31 = vstv %s1546_s4 }
 0x1c8   :  { %s884_s22 = spop %883 }
 0x1c9   :  { %s1548_s23 = spop %885  ;;  %v249_v49 = vstv %s884_s22 }
 0x1ca   :  { %v251_v51 = vmul.f32 0.5, %v249_v49  ;;  %v271_v61 = vstv %s1548_s23 }
 0x1cb   :  { %v272_v39 = vadd.f32 %v271_v61, %v237_v31 }
 0x1cc   :  { %s1550_s26 = spop %887  ;;  %v273_v32 = vadd.f32 %v251_v51, %v251_v51 }
 0x1cd   :  { %s1552_s28 = spop %889  ;;  %v311_v13 = vstv %s1550_s26 }
 0x1ce   :  { %v321_v17 = vstv %s1552_s28 }
 0x1cf   :  { %v322_v19 = vadd.f32 %v321_v17, %v311_v13 }
 0x1d0   :  { %s892_s1 = spop %891 }
 0x1d1   :  { %s1554_s2 = spop %893  ;;  %v333_v33 = vstv %s892_s1  ;;  %v323_v3 = vsub.f32 %v205_v10, %v322_v19 }
 0x1d2   :  { %v334_v18 = vadd.f32 %v333_v33, %v216_v59  ;;  %v353_v16 = vstv %s1554_s2 }
 0x1d3   :  { %v354_v62 = vadd.f32 %v353_v16, %v272_v39 }
 0x1d4   :  { %s896_s10 = spop %895 }
 0x1d5   :  { %s1556_s7 = spop %897  ;;  %v365_v53 = vstv %s896_s10 }
 0x1d6   :  { %v366_v55 = vmul.f32 0.5, %v365_v53  ;;  %v386_v25 = vstv %s1556_s7 }
 0x1d7   :  { %v387_v8 = vadd.f32 %v386_v25, %v354_v62 }
 0x1d8   :  { %s1558_s11 = spop %899  ;;  %v367_v57 = vadd.f32 %v366_v55, %v273_v32 }
 0x1d9   :  { %s1560_s16 = spop %901  ;;  %v428_v20 = vstv %s1558_s11 }
 0x1da   :  { %v388_v12 = vadd.f32 %v367_v57, %v366_v55  ;;  %v439_v40 = vstv %s1560_s16 }
 0x1db   :  { %v440_v54 = vadd.f32 %v439_v40, %v428_v20 }
 0x1dc   :  { %s904_s15 = spop %903 }
 0x1dd   :  { %s1562_s18 = spop %905  ;;  %v452_v34 = vstv %s904_s15  ;;  %v441_v6 = vsub.f32 %v323_v3, %v440_v54 }
 0x1de   :  { %v453_v26 = vadd.f32 %v452_v34, %v334_v18  ;;  %v472_v37 = vstv %s1562_s18 }
 0x1df   :  { %v473_v1 = vadd.f32 %v472_v37, %v387_v8 }
 0x1e0   :  { %s908_s0 = spop %907  ;;  %v793_v30 = vmax.f32 %v453_v26, 1.0  ;;  %vm792_vm13 = vcmp.gt.f32.partialorder %v453_v26, 0.0 }
 0x1e1   :  { %v484_v58 = vstv %s908_s0  ;;  %s910_s5 = spop %909 }
 0x1e2   :  { %v485_v14 = vmul.f32 0.5, %v484_v58  ;;  %1001 = vrcp.f32 %v793_v30  ;;  %v505_v22 = vstv %s910_s5 }
 0x1e3   :  { %v506_v38 = vadd.f32 %v505_v22, %v473_v1 }
 0x1e4   :  { %v486_v60 = vadd.f32 %v485_v14, %v388_v12  ;;  %s912_s9 = spop %911 }
 0x1e5   :  { %s914_s13 = spop %913  ;;  %v552_v27 = vstv %s912_s9 }
 0x1e6   :  { %v507_v5 = vadd.f32 %v486_v60, %v485_v14  ;;  %v573_v46 = vstv %s914_s13 }
 0x1e7   :  { %v574_v28 = vadd.f32 %v573_v46, %v552_v27 }
 0x1e8   :  { %v798_v42 = vmax.f32 %v507_v5, 1.0  ;;  %vm797_vm14 = vcmp.gt.f32.partialorder %v507_v5, 0.0 }
 0x1e9   :  { %v576_v35 = vmul.f32 0.125, %v574_v28 }
 0x1ea   :  { %1003 = vrcp.f32 %v798_v42 }
 0x1ef   :  { %v1002_v63 = vpop.eup %1001 }
 0x1f0   :  { %v795_v24 = vmul.f32 %v1002_v63, %v441_v6 }
 0x1f2   :  { %v796_v29 = vsel %vm792_vm13, %v795_v24, %v441_v6 }
 0x1f7   :  { %v1004_v23 = vpop.eup %1003 }
 0x1f8   :  { %v800_v9 = vmul.f32 %v1004_v23, %v506_v38 }
 0x1fa   :  { %v801_v15 = vsel %vm797_vm14, %v800_v9, %v506_v38 }
 0x1fb   :  { %v802_v36 = vadd.f32 %v801_v15, %v796_v29 }
 0x1fd   :  { %v803_v41 = vadd.f32 %v802_v36, %v576_v35 }
 0x211   :  { %v781_v44 = vpop.xlane.xlu0 %780 }
 0x212   :  { %v782_v45 = vrot.slane %v781_v44, 4 }
 0x214   :  { %v783_v2 = vadd.f32 %v782_v45, %v781_v44 }
 0x216   :  { %v784_v48 = vrot.slane %v783_v2, 2 }
 0x218   :  { %v785_v50 = vadd.f32 %v784_v48, %v783_v2 }
 0x21a   :  { %v786_v52 = vrot.slane %v785_v50, 1 }
 0x21c   :  { %v787_v0 = vadd.f32 %v786_v52, %v785_v50 }
 0x21e   :  { %915 = vpush %v787_v0 }
 0x24f   :  { %s916_s17 = spop %915 }
 0x250   :  { %v789_v47 = vstv %s916_s17 }
 0x251   :  { %v791_v4 = vmul.f32 0.015625, %v789_v47 }
 0x253   :  { %v804_v43 = vadd.f32 %v803_v41, %v791_v4 }
 0x255   :  { %805 = vst [vmem:[#allocation2] sm:$0xff] %v804_v43 }
 0x256   :  { %1016 = shalt.err (!%p1013_p4)
}
 0x257   :  { %815 = dma.vmem_to_hbm [thread:$0]  %s813_s25, 128, %s1222_s20, [#allocation3]  }
 0x258   :  { %1025 = dma.done.wait [#allocation3], 128  }
 0x259   :  { %1026 = vsyncadd [#allocation3], 4294967168 }
 0x25a   :  { %819 = vsyncpa [#allocation3], 1 }

</bundles_post_ra>
